<compile_context>
chip_gen: v6e
topology: v6e:2x2x1
jax: 0.10.0
libtpu: 0.0.40
codegen_flags: <defaults>
</compile_context>

<pallas_src>
import functools

import jax
import jax.numpy as jnp
import numpy as np
from jax import lax
from jax.experimental import pallas as pl
from jax.experimental.pallas import tpu as pltpu


def _bert_embedding_kernel(ids_ref, seed_ref, tok_hbm, pos_ref, o_ref,
                           gathered, sem,
                           *, rows_per_block, seq_len, dropout_p, training):
    # ids_ref : (B*S,) int32 in SMEM (scalar prefetch)      -- gather indices
    # seed_ref: (1,)   int32 in SMEM (scalar prefetch)      -- dropout seed
    # tok_hbm : (V, E) token embedding table, left in HBM (memory_space=pl.ANY)
    # pos_ref : (S, E) positional table block (VMEM resident)
    # o_ref   : (rows_per_block*S, E) output block (token-major)
    # gathered: (rows_per_block*S, E) VMEM scratch for the gathered token rows
    # sem     : (1,) DMA semaphore (all row copies are the same size, so a single
    #           counting semaphore with one wait per issued copy is sufficient)
    blk = pl.program_id(0)
    tokens_per_block = rows_per_block * seq_len
    base = blk * tokens_per_block
    unroll = tokens_per_block <= 64  # fully unroll the DMA issue/wait loops when small

    # ---- gather: one row DMA per token in this block (HBM -> VMEM) ----
    def issue(j, carry):
        tok_id = ids_ref[base + j]
        pltpu.make_async_copy(
            tok_hbm.at[pl.ds(tok_id, 1), :],
            gathered.at[pl.ds(j, 1), :],
            sem.at[0],
        ).start()
        return carry

    lax.fori_loop(0, tokens_per_block, issue, 0, unroll=unroll)

    # Wait for every issued copy (descriptor only supplies the size to wait for).
    def drain(j, carry):
        pltpu.make_async_copy(
            tok_hbm.at[pl.ds(0, 1), :],
            gathered.at[pl.ds(j, 1), :],
            sem.at[0],
        ).wait()
        return carry

    lax.fori_loop(0, tokens_per_block, drain, 0, unroll=unroll)

    # ---- positional add (+ dropout) on the VPU, token-major layout ----
    x = gathered[...].astype(jnp.float32)
    pos = pos_ref[...].astype(jnp.float32)
    x = x + jnp.tile(pos, (rows_per_block, 1))

    if training and dropout_p > 0.0:
        keep_p = 1.0 - dropout_p
        pltpu.prng_seed(seed_ref[0] + blk)
        bits = pltpu.bitcast(pltpu.prng_random_bits(x.shape), jnp.uint32)
        # clamp so dropout_p ~ 1.0 does not wrap the uint32 threshold to 0
        thresh = jnp.uint32(min(int(round(dropout_p * float(2 ** 32))), 2 ** 32 - 1))
        keep = bits >= thresh
        x = jnp.where(keep, x * (1.0 / keep_p), jnp.zeros_like(x))

    o_ref[...] = x.astype(o_ref.dtype)


def _choose_rows_per_block(batch, seq_len, target_tokens=512):
    """Largest divisor of `batch` whose token block is <= ~target_tokens."""
    best = 1
    for r in range(1, batch + 1):
        if batch % r == 0 and r * seq_len <= max(target_tokens, seq_len):
            best = r
    return best


def bert_embedding(sequence, token_table, pos_table, *, dropout_p=0.1,
                   training=False, seed=0, rows_per_block=None):
    """Pallas implementation of BERTEmbedding.forward(sequence).

    sequence   : (B, S) int ids
    token_table: (V, E) float token embedding weights (row 0 == 0 for padding_idx)
    pos_table  : (S, E) float positional embedding weights (seq_len == max_len)
    returns    : (B, S, E) float
    """
    B, S = sequence.shape
    V, E = token_table.shape
    assert pos_table.shape == (S, E), "seq_len must equal max_len (as in BERT4Rec)"

    if rows_per_block is None:
        rows_per_block = _choose_rows_per_block(B, S)
    assert B % rows_per_block == 0, "rows_per_block must divide batch"
    tokens_per_block = rows_per_block * S
    num_blocks = B // rows_per_block

    # ids live in SMEM (scalar prefetch) and drive the gather DMAs; clamp so a bad
    # id can never produce an out-of-bounds HBM read.
    ids_flat = jnp.clip(sequence.astype(jnp.int32).reshape(B * S), 0, V - 1)
    seed_arr = jnp.array([seed], dtype=jnp.int32)

    out_dtype = token_table.dtype
    itemsize = jnp.dtype(out_dtype).itemsize
    # actual VMEM buffers: pos table (x2 buffers) + output block (x2) + gather scratch
    block_bytes = (2 * S * E + 2 * tokens_per_block * E + tokens_per_block * E) * itemsize
    # generous headroom, but stay within v7x's 64 MiB physical VMEM on every generation
    vmem_limit = int(min(max(4 * block_bytes + (4 << 20), 32 << 20), 48 << 20))

    kernel = functools.partial(
        _bert_embedding_kernel,
        rows_per_block=rows_per_block,
        seq_len=S,
        dropout_p=float(dropout_p),
        training=bool(training),
    )

    grid_spec = pltpu.PrefetchScalarGridSpec(
        num_scalar_prefetch=2,           # ids + seed live in SMEM
        grid=(num_blocks,),
        in_specs=[
            pl.BlockSpec(memory_space=pl.ANY),                    # token table stays in HBM
            pl.BlockSpec((S, E), lambda b, ids, seed: (0, 0)),    # pos table, VMEM resident
        ],
        out_specs=pl.BlockSpec((tokens_per_block, E),
                               lambda b, ids, seed: (b, 0)),      # token-major output slab
        scratch_shapes=[
            pltpu.VMEM((tokens_per_block, E), token_table.dtype), # gathered token rows
            pltpu.SemaphoreType.DMA((1,)),
        ],
    )

    out2d = pl.pallas_call(
        kernel,
        grid_spec=grid_spec,
        out_shape=jax.ShapeDtypeStruct((B * S, E), out_dtype),
        compiler_params=pltpu.CompilerParams(
            dimension_semantics=("parallel",),   # batch blocks are independent (v7x megacore)
            vmem_limit_bytes=vmem_limit,
        ),
    )(ids_flat, seed_arr, token_table, pos_table)

    # Free relayout: (B*S, E) row-major == (B, S, E) row-major.
    return out2d.reshape(B, S, E)


if __name__ == "__main__":
    # Small shapes consistent with the module.  E=128 keeps the output store
    # lane-dense (for E not a multiple of 128 the kernel still runs, just with
    # masked partial stores).
    vocab_size, embed_size, max_len = 64, 128, 8
    B, S = 4, max_len

    key = jax.random.PRNGKey(0)
    k_tok, k_pos, k_ids = jax.random.split(key, 3)

    # Deterministic parameter init (TokenEmbedding has padding_idx=0 -> row 0 zeroed).
    token_table = 0.02 * jax.random.normal(k_tok, (vocab_size, embed_size), jnp.float32)
    token_table = token_table.at[0].set(0.0)
    pos_table = 0.02 * jax.random.normal(k_pos, (max_len, embed_size), jnp.float32)

    ids = jax.random.randint(k_ids, (B, S), 0, vocab_size, dtype=jnp.int32)
    ids = ids.at[0, -1].set(0)   # exercise the padding id

    # Eval-mode forward (dropout == identity); use 2 rows/block so the grid has
    # more than one step and the per-block gather path is exercised.
    out = bert_embedding(ids, token_table, pos_table, dropout_p=0.1,
                         training=False, rows_per_block=2)
    out = jax.block_until_ready(out)

    # Pure-JAX reference check.
    ref = token_table[ids] + pos_table[None, :, :]
    assert out.shape == (B, S, embed_size)
    np.testing.assert_allclose(np.asarray(out), np.asarray(ref), rtol=1e-5, atol=1e-5)

    print("KERNEL_OK")
</pallas_src>

<mosaic_0001>
module attributes {stable_mosaic.version = 11 : i64} {
  func.func @_bert_embedding_kernel(%arg0: i32, %arg1: memref<32xi32, #tpu.memory_space<smem>>, %arg2: memref<1xi32, #tpu.memory_space<smem>>, %arg3: memref<64x128xf32, #tpu.memory_space<any>>, %arg4: memref<8x128xf32, #tpu.memory_space<vmem>>, %arg5: memref<16x128xf32, #tpu.memory_space<vmem>>, %arg6: memref<16x128xf32, #tpu.memory_space<vmem>>, %arg7: memref<1x!tpu.dma_semaphore, #tpu.memory_space<semaphore_mem>>) attributes {dimension_semantics = [#tpu.dimension_semantics<parallel>], iteration_bounds = array<i64: 2>, scalar_prefetch = 2 : i64, scratch_operands = 2 : i64, tpu.core_type = #tpu.core_type<tc>, window_params = [{}, {pipeline_mode = #tpu.pipeline_mode<synchronous>, transform_indices = @transform_1, window_bounds = array<i64: 8, 128>}, {transform_indices = @transform_2, window_bounds = array<i64: 16, 128>}]} {
    %c16_i32 = arith.constant 16 : i32
    %0 = arith.muli %arg0, %c16_i32 : i32
    %c0_i32 = arith.constant 0 : i32
    %1 = arith.addi %0, %c0_i32 : i32
    %2 = arith.index_cast %1 : i32 to index
    %3 = memref.load %arg1[%2] : memref<32xi32, #tpu.memory_space<smem>>
    %c0_i32_0 = arith.constant 0 : i32
    %c0_i32_1 = arith.constant 0 : i32
    %4 = tpu.memref_slice %arg3[%3, %c0_i32_1] : memref<64x128xf32, #tpu.memory_space<any>> -> memref<1x128xf32, #tpu.memory_space<any>>
    %c0_i32_2 = arith.constant 0 : i32
    %5 = tpu.memref_slice %arg6[%c0_i32, %c0_i32_2] : memref<16x128xf32, #tpu.memory_space<vmem>> -> memref<1x128xf32, #tpu.memory_space<vmem>>
    %6 = tpu.memref_slice %arg7[%c0_i32_0] : memref<1x!tpu.dma_semaphore, #tpu.memory_space<semaphore_mem>> -> memref<1x!tpu.dma_semaphore, #tpu.memory_space<semaphore_mem>>
    %7 = tpu.memref_squeeze %6 : memref<1x!tpu.dma_semaphore, #tpu.memory_space<semaphore_mem>> -> memref<!tpu.dma_semaphore, #tpu.memory_space<semaphore_mem>>
    tpu.enqueue_dma source(%4 : memref<1x128xf32, #tpu.memory_space<any>>) target(%5 : memref<1x128xf32, #tpu.memory_space<vmem>>) target_semaphore(%7 : memref<!tpu.dma_semaphore, #tpu.memory_space<semaphore_mem>>)
    %c1_i32 = arith.constant 1 : i32
    %8 = arith.addi %0, %c1_i32 : i32
    %9 = arith.index_cast %8 : i32 to index
    %10 = memref.load %arg1[%9] : memref<32xi32, #tpu.memory_space<smem>>
    %c0_i32_3 = arith.constant 0 : i32
    %c0_i32_4 = arith.constant 0 : i32
    %11 = tpu.memref_slice %arg3[%10, %c0_i32_4] : memref<64x128xf32, #tpu.memory_space<any>> -> memref<1x128xf32, #tpu.memory_space<any>>
    %c0_i32_5 = arith.constant 0 : i32
    %12 = tpu.memref_slice %arg6[%c1_i32, %c0_i32_5] : memref<16x128xf32, #tpu.memory_space<vmem>> -> memref<1x128xf32, #tpu.memory_space<vmem>>
    %13 = tpu.memref_slice %arg7[%c0_i32_3] : memref<1x!tpu.dma_semaphore, #tpu.memory_space<semaphore_mem>> -> memref<1x!tpu.dma_semaphore, #tpu.memory_space<semaphore_mem>>
    %14 = tpu.memref_squeeze %13 : memref<1x!tpu.dma_semaphore, #tpu.memory_space<semaphore_mem>> -> memref<!tpu.dma_semaphore, #tpu.memory_space<semaphore_mem>>
    tpu.enqueue_dma source(%11 : memref<1x128xf32, #tpu.memory_space<any>>) target(%12 : memref<1x128xf32, #tpu.memory_space<vmem>>) target_semaphore(%14 : memref<!tpu.dma_semaphore, #tpu.memory_space<semaphore_mem>>)
    %c2_i32 = arith.constant 2 : i32
    %15 = arith.addi %0, %c2_i32 : i32
    %16 = arith.index_cast %15 : i32 to index
    %17 = memref.load %arg1[%16] : memref<32xi32, #tpu.memory_space<smem>>
    %c0_i32_6 = arith.constant 0 : i32
    %c0_i32_7 = arith.constant 0 : i32
    %18 = tpu.memref_slice %arg3[%17, %c0_i32_7] : memref<64x128xf32, #tpu.memory_space<any>> -> memref<1x128xf32, #tpu.memory_space<any>>
    %c0_i32_8 = arith.constant 0 : i32
    %19 = tpu.memref_slice %arg6[%c2_i32, %c0_i32_8] : memref<16x128xf32, #tpu.memory_space<vmem>> -> memref<1x128xf32, #tpu.memory_space<vmem>>
    %20 = tpu.memref_slice %arg7[%c0_i32_6] : memref<1x!tpu.dma_semaphore, #tpu.memory_space<semaphore_mem>> -> memref<1x!tpu.dma_semaphore, #tpu.memory_space<semaphore_mem>>
    %21 = tpu.memref_squeeze %20 : memref<1x!tpu.dma_semaphore, #tpu.memory_space<semaphore_mem>> -> memref<!tpu.dma_semaphore, #tpu.memory_space<semaphore_mem>>
    tpu.enqueue_dma source(%18 : memref<1x128xf32, #tpu.memory_space<any>>) target(%19 : memref<1x128xf32, #tpu.memory_space<vmem>>) target_semaphore(%21 : memref<!tpu.dma_semaphore, #tpu.memory_space<semaphore_mem>>)
    %c3_i32 = arith.constant 3 : i32
    %22 = arith.addi %0, %c3_i32 : i32
    %23 = arith.index_cast %22 : i32 to index
    %24 = memref.load %arg1[%23] : memref<32xi32, #tpu.memory_space<smem>>
    %c0_i32_9 = arith.constant 0 : i32
    %c0_i32_10 = arith.constant 0 : i32
    %25 = tpu.memref_slice %arg3[%24, %c0_i32_10] : memref<64x128xf32, #tpu.memory_space<any>> -> memref<1x128xf32, #tpu.memory_space<any>>
    %c0_i32_11 = arith.constant 0 : i32
    %26 = tpu.memref_slice %arg6[%c3_i32, %c0_i32_11] : memref<16x128xf32, #tpu.memory_space<vmem>> -> memref<1x128xf32, #tpu.memory_space<vmem>>
    %27 = tpu.memref_slice %arg7[%c0_i32_9] : memref<1x!tpu.dma_semaphore, #tpu.memory_space<semaphore_mem>> -> memref<1x!tpu.dma_semaphore, #tpu.memory_space<semaphore_mem>>
    %28 = tpu.memref_squeeze %27 : memref<1x!tpu.dma_semaphore, #tpu.memory_space<semaphore_mem>> -> memref<!tpu.dma_semaphore, #tpu.memory_space<semaphore_mem>>
    tpu.enqueue_dma source(%25 : memref<1x128xf32, #tpu.memory_space<any>>) target(%26 : memref<1x128xf32, #tpu.memory_space<vmem>>) target_semaphore(%28 : memref<!tpu.dma_semaphore, #tpu.memory_space<semaphore_mem>>)
    %c4_i32 = arith.constant 4 : i32
    %29 = arith.addi %0, %c4_i32 : i32
    %30 = arith.index_cast %29 : i32 to index
    %31 = memref.load %arg1[%30] : memref<32xi32, #tpu.memory_space<smem>>
    %c0_i32_12 = arith.constant 0 : i32
    %c0_i32_13 = arith.constant 0 : i32
    %32 = tpu.memref_slice %arg3[%31, %c0_i32_13] : memref<64x128xf32, #tpu.memory_space<any>> -> memref<1x128xf32, #tpu.memory_space<any>>
    %c0_i32_14 = arith.constant 0 : i32
    %33 = tpu.memref_slice %arg6[%c4_i32, %c0_i32_14] : memref<16x128xf32, #tpu.memory_space<vmem>> -> memref<1x128xf32, #tpu.memory_space<vmem>>
    %34 = tpu.memref_slice %arg7[%c0_i32_12] : memref<1x!tpu.dma_semaphore, #tpu.memory_space<semaphore_mem>> -> memref<1x!tpu.dma_semaphore, #tpu.memory_space<semaphore_mem>>
    %35 = tpu.memref_squeeze %34 : memref<1x!tpu.dma_semaphore, #tpu.memory_space<semaphore_mem>> -> memref<!tpu.dma_semaphore, #tpu.memory_space<semaphore_mem>>
    tpu.enqueue_dma source(%32 : memref<1x128xf32, #tpu.memory_space<any>>) target(%33 : memref<1x128xf32, #tpu.memory_space<vmem>>) target_semaphore(%35 : memref<!tpu.dma_semaphore, #tpu.memory_space<semaphore_mem>>)
    %c5_i32 = arith.constant 5 : i32
    %36 = arith.addi %0, %c5_i32 : i32
    %37 = arith.index_cast %36 : i32 to index
    %38 = memref.load %arg1[%37] : memref<32xi32, #tpu.memory_space<smem>>
    %c0_i32_15 = arith.constant 0 : i32
    %c0_i32_16 = arith.constant 0 : i32
    %39 = tpu.memref_slice %arg3[%38, %c0_i32_16] : memref<64x128xf32, #tpu.memory_space<any>> -> memref<1x128xf32, #tpu.memory_space<any>>
    %c0_i32_17 = arith.constant 0 : i32
    %40 = tpu.memref_slice %arg6[%c5_i32, %c0_i32_17] : memref<16x128xf32, #tpu.memory_space<vmem>> -> memref<1x128xf32, #tpu.memory_space<vmem>>
    %41 = tpu.memref_slice %arg7[%c0_i32_15] : memref<1x!tpu.dma_semaphore, #tpu.memory_space<semaphore_mem>> -> memref<1x!tpu.dma_semaphore, #tpu.memory_space<semaphore_mem>>
    %42 = tpu.memref_squeeze %41 : memref<1x!tpu.dma_semaphore, #tpu.memory_space<semaphore_mem>> -> memref<!tpu.dma_semaphore, #tpu.memory_space<semaphore_mem>>
    tpu.enqueue_dma source(%39 : memref<1x128xf32, #tpu.memory_space<any>>) target(%40 : memref<1x128xf32, #tpu.memory_space<vmem>>) target_semaphore(%42 : memref<!tpu.dma_semaphore, #tpu.memory_space<semaphore_mem>>)
    %c6_i32 = arith.constant 6 : i32
    %43 = arith.addi %0, %c6_i32 : i32
    %44 = arith.index_cast %43 : i32 to index
    %45 = memref.load %arg1[%44] : memref<32xi32, #tpu.memory_space<smem>>
    %c0_i32_18 = arith.constant 0 : i32
    %c0_i32_19 = arith.constant 0 : i32
    %46 = tpu.memref_slice %arg3[%45, %c0_i32_19] : memref<64x128xf32, #tpu.memory_space<any>> -> memref<1x128xf32, #tpu.memory_space<any>>
    %c0_i32_20 = arith.constant 0 : i32
    %47 = tpu.memref_slice %arg6[%c6_i32, %c0_i32_20] : memref<16x128xf32, #tpu.memory_space<vmem>> -> memref<1x128xf32, #tpu.memory_space<vmem>>
    %48 = tpu.memref_slice %arg7[%c0_i32_18] : memref<1x!tpu.dma_semaphore, #tpu.memory_space<semaphore_mem>> -> memref<1x!tpu.dma_semaphore, #tpu.memory_space<semaphore_mem>>
    %49 = tpu.memref_squeeze %48 : memref<1x!tpu.dma_semaphore, #tpu.memory_space<semaphore_mem>> -> memref<!tpu.dma_semaphore, #tpu.memory_space<semaphore_mem>>
    tpu.enqueue_dma source(%46 : memref<1x128xf32, #tpu.memory_space<any>>) target(%47 : memref<1x128xf32, #tpu.memory_space<vmem>>) target_semaphore(%49 : memref<!tpu.dma_semaphore, #tpu.memory_space<semaphore_mem>>)
    %c7_i32 = arith.constant 7 : i32
    %50 = arith.addi %0, %c7_i32 : i32
    %51 = arith.index_cast %50 : i32 to index
    %52 = memref.load %arg1[%51] : memref<32xi32, #tpu.memory_space<smem>>
    %c0_i32_21 = arith.constant 0 : i32
    %c0_i32_22 = arith.constant 0 : i32
    %53 = tpu.memref_slice %arg3[%52, %c0_i32_22] : memref<64x128xf32, #tpu.memory_space<any>> -> memref<1x128xf32, #tpu.memory_space<any>>
    %c0_i32_23 = arith.constant 0 : i32
    %54 = tpu.memref_slice %arg6[%c7_i32, %c0_i32_23] : memref<16x128xf32, #tpu.memory_space<vmem>> -> memref<1x128xf32, #tpu.memory_space<vmem>>
    %55 = tpu.memref_slice %arg7[%c0_i32_21] : memref<1x!tpu.dma_semaphore, #tpu.memory_space<semaphore_mem>> -> memref<1x!tpu.dma_semaphore, #tpu.memory_space<semaphore_mem>>
    %56 = tpu.memref_squeeze %55 : memref<1x!tpu.dma_semaphore, #tpu.memory_space<semaphore_mem>> -> memref<!tpu.dma_semaphore, #tpu.memory_space<semaphore_mem>>
    tpu.enqueue_dma source(%53 : memref<1x128xf32, #tpu.memory_space<any>>) target(%54 : memref<1x128xf32, #tpu.memory_space<vmem>>) target_semaphore(%56 : memref<!tpu.dma_semaphore, #tpu.memory_space<semaphore_mem>>)
    %c8_i32 = arith.constant 8 : i32
    %57 = arith.addi %0, %c8_i32 : i32
    %58 = arith.index_cast %57 : i32 to index
    %59 = memref.load %arg1[%58] : memref<32xi32, #tpu.memory_space<smem>>
    %c0_i32_24 = arith.constant 0 : i32
    %c0_i32_25 = arith.constant 0 : i32
    %60 = tpu.memref_slice %arg3[%59, %c0_i32_25] : memref<64x128xf32, #tpu.memory_space<any>> -> memref<1x128xf32, #tpu.memory_space<any>>
    %c0_i32_26 = arith.constant 0 : i32
    %61 = tpu.memref_slice %arg6[%c8_i32, %c0_i32_26] : memref<16x128xf32, #tpu.memory_space<vmem>> -> memref<1x128xf32, #tpu.memory_space<vmem>>
    %62 = tpu.memref_slice %arg7[%c0_i32_24] : memref<1x!tpu.dma_semaphore, #tpu.memory_space<semaphore_mem>> -> memref<1x!tpu.dma_semaphore, #tpu.memory_space<semaphore_mem>>
    %63 = tpu.memref_squeeze %62 : memref<1x!tpu.dma_semaphore, #tpu.memory_space<semaphore_mem>> -> memref<!tpu.dma_semaphore, #tpu.memory_space<semaphore_mem>>
    tpu.enqueue_dma source(%60 : memref<1x128xf32, #tpu.memory_space<any>>) target(%61 : memref<1x128xf32, #tpu.memory_space<vmem>>) target_semaphore(%63 : memref<!tpu.dma_semaphore, #tpu.memory_space<semaphore_mem>>)
    %c9_i32 = arith.constant 9 : i32
    %64 = arith.addi %0, %c9_i32 : i32
    %65 = arith.index_cast %64 : i32 to index
    %66 = memref.load %arg1[%65] : memref<32xi32, #tpu.memory_space<smem>>
    %c0_i32_27 = arith.constant 0 : i32
    %c0_i32_28 = arith.constant 0 : i32
    %67 = tpu.memref_slice %arg3[%66, %c0_i32_28] : memref<64x128xf32, #tpu.memory_space<any>> -> memref<1x128xf32, #tpu.memory_space<any>>
    %c0_i32_29 = arith.constant 0 : i32
    %68 = tpu.memref_slice %arg6[%c9_i32, %c0_i32_29] : memref<16x128xf32, #tpu.memory_space<vmem>> -> memref<1x128xf32, #tpu.memory_space<vmem>>
    %69 = tpu.memref_slice %arg7[%c0_i32_27] : memref<1x!tpu.dma_semaphore, #tpu.memory_space<semaphore_mem>> -> memref<1x!tpu.dma_semaphore, #tpu.memory_space<semaphore_mem>>
    %70 = tpu.memref_squeeze %69 : memref<1x!tpu.dma_semaphore, #tpu.memory_space<semaphore_mem>> -> memref<!tpu.dma_semaphore, #tpu.memory_space<semaphore_mem>>
    tpu.enqueue_dma source(%67 : memref<1x128xf32, #tpu.memory_space<any>>) target(%68 : memref<1x128xf32, #tpu.memory_space<vmem>>) target_semaphore(%70 : memref<!tpu.dma_semaphore, #tpu.memory_space<semaphore_mem>>)
    %c10_i32 = arith.constant 10 : i32
    %71 = arith.addi %0, %c10_i32 : i32
    %72 = arith.index_cast %71 : i32 to index
    %73 = memref.load %arg1[%72] : memref<32xi32, #tpu.memory_space<smem>>
    %c0_i32_30 = arith.constant 0 : i32
    %c0_i32_31 = arith.constant 0 : i32
    %74 = tpu.memref_slice %arg3[%73, %c0_i32_31] : memref<64x128xf32, #tpu.memory_space<any>> -> memref<1x128xf32, #tpu.memory_space<any>>
    %c0_i32_32 = arith.constant 0 : i32
    %75 = tpu.memref_slice %arg6[%c10_i32, %c0_i32_32] : memref<16x128xf32, #tpu.memory_space<vmem>> -> memref<1x128xf32, #tpu.memory_space<vmem>>
    %76 = tpu.memref_slice %arg7[%c0_i32_30] : memref<1x!tpu.dma_semaphore, #tpu.memory_space<semaphore_mem>> -> memref<1x!tpu.dma_semaphore, #tpu.memory_space<semaphore_mem>>
    %77 = tpu.memref_squeeze %76 : memref<1x!tpu.dma_semaphore, #tpu.memory_space<semaphore_mem>> -> memref<!tpu.dma_semaphore, #tpu.memory_space<semaphore_mem>>
    tpu.enqueue_dma source(%74 : memref<1x128xf32, #tpu.memory_space<any>>) target(%75 : memref<1x128xf32, #tpu.memory_space<vmem>>) target_semaphore(%77 : memref<!tpu.dma_semaphore, #tpu.memory_space<semaphore_mem>>)
    %c11_i32 = arith.constant 11 : i32
    %78 = arith.addi %0, %c11_i32 : i32
    %79 = arith.index_cast %78 : i32 to index
    %80 = memref.load %arg1[%79] : memref<32xi32, #tpu.memory_space<smem>>
    %c0_i32_33 = arith.constant 0 : i32
    %c0_i32_34 = arith.constant 0 : i32
    %81 = tpu.memref_slice %arg3[%80, %c0_i32_34] : memref<64x128xf32, #tpu.memory_space<any>> -> memref<1x128xf32, #tpu.memory_space<any>>
    %c0_i32_35 = arith.constant 0 : i32
    %82 = tpu.memref_slice %arg6[%c11_i32, %c0_i32_35] : memref<16x128xf32, #tpu.memory_space<vmem>> -> memref<1x128xf32, #tpu.memory_space<vmem>>
    %83 = tpu.memref_slice %arg7[%c0_i32_33] : memref<1x!tpu.dma_semaphore, #tpu.memory_space<semaphore_mem>> -> memref<1x!tpu.dma_semaphore, #tpu.memory_space<semaphore_mem>>
    %84 = tpu.memref_squeeze %83 : memref<1x!tpu.dma_semaphore, #tpu.memory_space<semaphore_mem>> -> memref<!tpu.dma_semaphore, #tpu.memory_space<semaphore_mem>>
    tpu.enqueue_dma source(%81 : memref<1x128xf32, #tpu.memory_space<any>>) target(%82 : memref<1x128xf32, #tpu.memory_space<vmem>>) target_semaphore(%84 : memref<!tpu.dma_semaphore, #tpu.memory_space<semaphore_mem>>)
    %c12_i32 = arith.constant 12 : i32
    %85 = arith.addi %0, %c12_i32 : i32
    %86 = arith.index_cast %85 : i32 to index
    %87 = memref.load %arg1[%86] : memref<32xi32, #tpu.memory_space<smem>>
    %c0_i32_36 = arith.constant 0 : i32
    %c0_i32_37 = arith.constant 0 : i32
    %88 = tpu.memref_slice %arg3[%87, %c0_i32_37] : memref<64x128xf32, #tpu.memory_space<any>> -> memref<1x128xf32, #tpu.memory_space<any>>
    %c0_i32_38 = arith.constant 0 : i32
    %89 = tpu.memref_slice %arg6[%c12_i32, %c0_i32_38] : memref<16x128xf32, #tpu.memory_space<vmem>> -> memref<1x128xf32, #tpu.memory_space<vmem>>
    %90 = tpu.memref_slice %arg7[%c0_i32_36] : memref<1x!tpu.dma_semaphore, #tpu.memory_space<semaphore_mem>> -> memref<1x!tpu.dma_semaphore, #tpu.memory_space<semaphore_mem>>
    %91 = tpu.memref_squeeze %90 : memref<1x!tpu.dma_semaphore, #tpu.memory_space<semaphore_mem>> -> memref<!tpu.dma_semaphore, #tpu.memory_space<semaphore_mem>>
    tpu.enqueue_dma source(%88 : memref<1x128xf32, #tpu.memory_space<any>>) target(%89 : memref<1x128xf32, #tpu.memory_space<vmem>>) target_semaphore(%91 : memref<!tpu.dma_semaphore, #tpu.memory_space<semaphore_mem>>)
    %c13_i32 = arith.constant 13 : i32
    %92 = arith.addi %0, %c13_i32 : i32
    %93 = arith.index_cast %92 : i32 to index
    %94 = memref.load %arg1[%93] : memref<32xi32, #tpu.memory_space<smem>>
    %c0_i32_39 = arith.constant 0 : i32
    %c0_i32_40 = arith.constant 0 : i32
    %95 = tpu.memref_slice %arg3[%94, %c0_i32_40] : memref<64x128xf32, #tpu.memory_space<any>> -> memref<1x128xf32, #tpu.memory_space<any>>
    %c0_i32_41 = arith.constant 0 : i32
    %96 = tpu.memref_slice %arg6[%c13_i32, %c0_i32_41] : memref<16x128xf32, #tpu.memory_space<vmem>> -> memref<1x128xf32, #tpu.memory_space<vmem>>
    %97 = tpu.memref_slice %arg7[%c0_i32_39] : memref<1x!tpu.dma_semaphore, #tpu.memory_space<semaphore_mem>> -> memref<1x!tpu.dma_semaphore, #tpu.memory_space<semaphore_mem>>
    %98 = tpu.memref_squeeze %97 : memref<1x!tpu.dma_semaphore, #tpu.memory_space<semaphore_mem>> -> memref<!tpu.dma_semaphore, #tpu.memory_space<semaphore_mem>>
    tpu.enqueue_dma source(%95 : memref<1x128xf32, #tpu.memory_space<any>>) target(%96 : memref<1x128xf32, #tpu.memory_space<vmem>>) target_semaphore(%98 : memref<!tpu.dma_semaphore, #tpu.memory_space<semaphore_mem>>)
    %c14_i32 = arith.constant 14 : i32
    %99 = arith.addi %0, %c14_i32 : i32
    %100 = arith.index_cast %99 : i32 to index
    %101 = memref.load %arg1[%100] : memref<32xi32, #tpu.memory_space<smem>>
    %c0_i32_42 = arith.constant 0 : i32
    %c0_i32_43 = arith.constant 0 : i32
    %102 = tpu.memref_slice %arg3[%101, %c0_i32_43] : memref<64x128xf32, #tpu.memory_space<any>> -> memref<1x128xf32, #tpu.memory_space<any>>
    %c0_i32_44 = arith.constant 0 : i32
    %103 = tpu.memref_slice %arg6[%c14_i32, %c0_i32_44] : memref<16x128xf32, #tpu.memory_space<vmem>> -> memref<1x128xf32, #tpu.memory_space<vmem>>
    %104 = tpu.memref_slice %arg7[%c0_i32_42] : memref<1x!tpu.dma_semaphore, #tpu.memory_space<semaphore_mem>> -> memref<1x!tpu.dma_semaphore, #tpu.memory_space<semaphore_mem>>
    %105 = tpu.memref_squeeze %104 : memref<1x!tpu.dma_semaphore, #tpu.memory_space<semaphore_mem>> -> memref<!tpu.dma_semaphore, #tpu.memory_space<semaphore_mem>>
    tpu.enqueue_dma source(%102 : memref<1x128xf32, #tpu.memory_space<any>>) target(%103 : memref<1x128xf32, #tpu.memory_space<vmem>>) target_semaphore(%105 : memref<!tpu.dma_semaphore, #tpu.memory_space<semaphore_mem>>)
    %c15_i32 = arith.constant 15 : i32
    %106 = arith.addi %0, %c15_i32 : i32
    %107 = arith.index_cast %106 : i32 to index
    %108 = memref.load %arg1[%107] : memref<32xi32, #tpu.memory_space<smem>>
    %c0_i32_45 = arith.constant 0 : i32
    %c0_i32_46 = arith.constant 0 : i32
    %109 = tpu.memref_slice %arg3[%108, %c0_i32_46] : memref<64x128xf32, #tpu.memory_space<any>> -> memref<1x128xf32, #tpu.memory_space<any>>
    %c0_i32_47 = arith.constant 0 : i32
    %110 = tpu.memref_slice %arg6[%c15_i32, %c0_i32_47] : memref<16x128xf32, #tpu.memory_space<vmem>> -> memref<1x128xf32, #tpu.memory_space<vmem>>
    %111 = tpu.memref_slice %arg7[%c0_i32_45] : memref<1x!tpu.dma_semaphore, #tpu.memory_space<semaphore_mem>> -> memref<1x!tpu.dma_semaphore, #tpu.memory_space<semaphore_mem>>
    %112 = tpu.memref_squeeze %111 : memref<1x!tpu.dma_semaphore, #tpu.memory_space<semaphore_mem>> -> memref<!tpu.dma_semaphore, #tpu.memory_space<semaphore_mem>>
    tpu.enqueue_dma source(%109 : memref<1x128xf32, #tpu.memory_space<any>>) target(%110 : memref<1x128xf32, #tpu.memory_space<vmem>>) target_semaphore(%112 : memref<!tpu.dma_semaphore, #tpu.memory_space<semaphore_mem>>)
    %c16_i32_48 = arith.constant 16 : i32
    %c0_i32_49 = arith.constant 0 : i32
    %c0_i32_50 = arith.constant 0 : i32
    %c0_i32_51 = arith.constant 0 : i32
    %c0_i32_52 = arith.constant 0 : i32
    %113 = tpu.memref_slice %arg3[%c0_i32_51, %c0_i32_52] : memref<64x128xf32, #tpu.memory_space<any>> -> memref<1x128xf32, #tpu.memory_space<any>>
    %c0_i32_53 = arith.constant 0 : i32
    %114 = tpu.memref_slice %arg6[%c0_i32_49, %c0_i32_53] : memref<16x128xf32, #tpu.memory_space<vmem>> -> memref<1x128xf32, #tpu.memory_space<vmem>>
    %115 = tpu.memref_slice %arg7[%c0_i32_50] : memref<1x!tpu.dma_semaphore, #tpu.memory_space<semaphore_mem>> -> memref<1x!tpu.dma_semaphore, #tpu.memory_space<semaphore_mem>>
    %116 = tpu.memref_squeeze %115 : memref<1x!tpu.dma_semaphore, #tpu.memory_space<semaphore_mem>> -> memref<!tpu.dma_semaphore, #tpu.memory_space<semaphore_mem>>
    tpu.wait_dma2 semaphore(%116 : memref<!tpu.dma_semaphore, #tpu.memory_space<semaphore_mem>>) src(%113 : memref<1x128xf32, #tpu.memory_space<any>>) dst(%114 : memref<1x128xf32, #tpu.memory_space<vmem>>)
    %c1_i32_54 = arith.constant 1 : i32
    %c0_i32_55 = arith.constant 0 : i32
    %c0_i32_56 = arith.constant 0 : i32
    %c0_i32_57 = arith.constant 0 : i32
    %117 = tpu.memref_slice %arg3[%c0_i32_56, %c0_i32_57] : memref<64x128xf32, #tpu.memory_space<any>> -> memref<1x128xf32, #tpu.memory_space<any>>
    %c0_i32_58 = arith.constant 0 : i32
    %118 = tpu.memref_slice %arg6[%c1_i32_54, %c0_i32_58] : memref<16x128xf32, #tpu.memory_space<vmem>> -> memref<1x128xf32, #tpu.memory_space<vmem>>
    %119 = tpu.memref_slice %arg7[%c0_i32_55] : memref<1x!tpu.dma_semaphore, #tpu.memory_space<semaphore_mem>> -> memref<1x!tpu.dma_semaphore, #tpu.memory_space<semaphore_mem>>
    %120 = tpu.memref_squeeze %119 : memref<1x!tpu.dma_semaphore, #tpu.memory_space<semaphore_mem>> -> memref<!tpu.dma_semaphore, #tpu.memory_space<semaphore_mem>>
    tpu.wait_dma2 semaphore(%120 : memref<!tpu.dma_semaphore, #tpu.memory_space<semaphore_mem>>) src(%117 : memref<1x128xf32, #tpu.memory_space<any>>) dst(%118 : memref<1x128xf32, #tpu.memory_space<vmem>>)
    %c2_i32_59 = arith.constant 2 : i32
    %c0_i32_60 = arith.constant 0 : i32
    %c0_i32_61 = arith.constant 0 : i32
    %c0_i32_62 = arith.constant 0 : i32
    %121 = tpu.memref_slice %arg3[%c0_i32_61, %c0_i32_62] : memref<64x128xf32, #tpu.memory_space<any>> -> memref<1x128xf32, #tpu.memory_space<any>>
    %c0_i32_63 = arith.constant 0 : i32
    %122 = tpu.memref_slice %arg6[%c2_i32_59, %c0_i32_63] : memref<16x128xf32, #tpu.memory_space<vmem>> -> memref<1x128xf32, #tpu.memory_space<vmem>>
    %123 = tpu.memref_slice %arg7[%c0_i32_60] : memref<1x!tpu.dma_semaphore, #tpu.memory_space<semaphore_mem>> -> memref<1x!tpu.dma_semaphore, #tpu.memory_space<semaphore_mem>>
    %124 = tpu.memref_squeeze %123 : memref<1x!tpu.dma_semaphore, #tpu.memory_space<semaphore_mem>> -> memref<!tpu.dma_semaphore, #tpu.memory_space<semaphore_mem>>
    tpu.wait_dma2 semaphore(%124 : memref<!tpu.dma_semaphore, #tpu.memory_space<semaphore_mem>>) src(%121 : memref<1x128xf32, #tpu.memory_space<any>>) dst(%122 : memref<1x128xf32, #tpu.memory_space<vmem>>)
    %c3_i32_64 = arith.constant 3 : i32
    %c0_i32_65 = arith.constant 0 : i32
    %c0_i32_66 = arith.constant 0 : i32
    %c0_i32_67 = arith.constant 0 : i32
    %125 = tpu.memref_slice %arg3[%c0_i32_66, %c0_i32_67] : memref<64x128xf32, #tpu.memory_space<any>> -> memref<1x128xf32, #tpu.memory_space<any>>
    %c0_i32_68 = arith.constant 0 : i32
    %126 = tpu.memref_slice %arg6[%c3_i32_64, %c0_i32_68] : memref<16x128xf32, #tpu.memory_space<vmem>> -> memref<1x128xf32, #tpu.memory_space<vmem>>
    %127 = tpu.memref_slice %arg7[%c0_i32_65] : memref<1x!tpu.dma_semaphore, #tpu.memory_space<semaphore_mem>> -> memref<1x!tpu.dma_semaphore, #tpu.memory_space<semaphore_mem>>
    %128 = tpu.memref_squeeze %127 : memref<1x!tpu.dma_semaphore, #tpu.memory_space<semaphore_mem>> -> memref<!tpu.dma_semaphore, #tpu.memory_space<semaphore_mem>>
    tpu.wait_dma2 semaphore(%128 : memref<!tpu.dma_semaphore, #tpu.memory_space<semaphore_mem>>) src(%125 : memref<1x128xf32, #tpu.memory_space<any>>) dst(%126 : memref<1x128xf32, #tpu.memory_space<vmem>>)
    %c4_i32_69 = arith.constant 4 : i32
    %c0_i32_70 = arith.constant 0 : i32
    %c0_i32_71 = arith.constant 0 : i32
    %c0_i32_72 = arith.constant 0 : i32
    %129 = tpu.memref_slice %arg3[%c0_i32_71, %c0_i32_72] : memref<64x128xf32, #tpu.memory_space<any>> -> memref<1x128xf32, #tpu.memory_space<any>>
    %c0_i32_73 = arith.constant 0 : i32
    %130 = tpu.memref_slice %arg6[%c4_i32_69, %c0_i32_73] : memref<16x128xf32, #tpu.memory_space<vmem>> -> memref<1x128xf32, #tpu.memory_space<vmem>>
    %131 = tpu.memref_slice %arg7[%c0_i32_70] : memref<1x!tpu.dma_semaphore, #tpu.memory_space<semaphore_mem>> -> memref<1x!tpu.dma_semaphore, #tpu.memory_space<semaphore_mem>>
    %132 = tpu.memref_squeeze %131 : memref<1x!tpu.dma_semaphore, #tpu.memory_space<semaphore_mem>> -> memref<!tpu.dma_semaphore, #tpu.memory_space<semaphore_mem>>
    tpu.wait_dma2 semaphore(%132 : memref<!tpu.dma_semaphore, #tpu.memory_space<semaphore_mem>>) src(%129 : memref<1x128xf32, #tpu.memory_space<any>>) dst(%130 : memref<1x128xf32, #tpu.memory_space<vmem>>)
    %c5_i32_74 = arith.constant 5 : i32
    %c0_i32_75 = arith.constant 0 : i32
    %c0_i32_76 = arith.constant 0 : i32
    %c0_i32_77 = arith.constant 0 : i32
    %133 = tpu.memref_slice %arg3[%c0_i32_76, %c0_i32_77] : memref<64x128xf32, #tpu.memory_space<any>> -> memref<1x128xf32, #tpu.memory_space<any>>
    %c0_i32_78 = arith.constant 0 : i32
    %134 = tpu.memref_slice %arg6[%c5_i32_74, %c0_i32_78] : memref<16x128xf32, #tpu.memory_space<vmem>> -> memref<1x128xf32, #tpu.memory_space<vmem>>
    %135 = tpu.memref_slice %arg7[%c0_i32_75] : memref<1x!tpu.dma_semaphore, #tpu.memory_space<semaphore_mem>> -> memref<1x!tpu.dma_semaphore, #tpu.memory_space<semaphore_mem>>
    %136 = tpu.memref_squeeze %135 : memref<1x!tpu.dma_semaphore, #tpu.memory_space<semaphore_mem>> -> memref<!tpu.dma_semaphore, #tpu.memory_space<semaphore_mem>>
    tpu.wait_dma2 semaphore(%136 : memref<!tpu.dma_semaphore, #tpu.memory_space<semaphore_mem>>) src(%133 : memref<1x128xf32, #tpu.memory_space<any>>) dst(%134 : memref<1x128xf32, #tpu.memory_space<vmem>>)
    %c6_i32_79 = arith.constant 6 : i32
    %c0_i32_80 = arith.constant 0 : i32
    %c0_i32_81 = arith.constant 0 : i32
    %c0_i32_82 = arith.constant 0 : i32
    %137 = tpu.memref_slice %arg3[%c0_i32_81, %c0_i32_82] : memref<64x128xf32, #tpu.memory_space<any>> -> memref<1x128xf32, #tpu.memory_space<any>>
    %c0_i32_83 = arith.constant 0 : i32
    %138 = tpu.memref_slice %arg6[%c6_i32_79, %c0_i32_83] : memref<16x128xf32, #tpu.memory_space<vmem>> -> memref<1x128xf32, #tpu.memory_space<vmem>>
    %139 = tpu.memref_slice %arg7[%c0_i32_80] : memref<1x!tpu.dma_semaphore, #tpu.memory_space<semaphore_mem>> -> memref<1x!tpu.dma_semaphore, #tpu.memory_space<semaphore_mem>>
    %140 = tpu.memref_squeeze %139 : memref<1x!tpu.dma_semaphore, #tpu.memory_space<semaphore_mem>> -> memref<!tpu.dma_semaphore, #tpu.memory_space<semaphore_mem>>
    tpu.wait_dma2 semaphore(%140 : memref<!tpu.dma_semaphore, #tpu.memory_space<semaphore_mem>>) src(%137 : memref<1x128xf32, #tpu.memory_space<any>>) dst(%138 : memref<1x128xf32, #tpu.memory_space<vmem>>)
    %c7_i32_84 = arith.constant 7 : i32
    %c0_i32_85 = arith.constant 0 : i32
    %c0_i32_86 = arith.constant 0 : i32
    %c0_i32_87 = arith.constant 0 : i32
    %141 = tpu.memref_slice %arg3[%c0_i32_86, %c0_i32_87] : memref<64x128xf32, #tpu.memory_space<any>> -> memref<1x128xf32, #tpu.memory_space<any>>
    %c0_i32_88 = arith.constant 0 : i32
    %142 = tpu.memref_slice %arg6[%c7_i32_84, %c0_i32_88] : memref<16x128xf32, #tpu.memory_space<vmem>> -> memref<1x128xf32, #tpu.memory_space<vmem>>
    %143 = tpu.memref_slice %arg7[%c0_i32_85] : memref<1x!tpu.dma_semaphore, #tpu.memory_space<semaphore_mem>> -> memref<1x!tpu.dma_semaphore, #tpu.memory_space<semaphore_mem>>
    %144 = tpu.memref_squeeze %143 : memref<1x!tpu.dma_semaphore, #tpu.memory_space<semaphore_mem>> -> memref<!tpu.dma_semaphore, #tpu.memory_space<semaphore_mem>>
    tpu.wait_dma2 semaphore(%144 : memref<!tpu.dma_semaphore, #tpu.memory_space<semaphore_mem>>) src(%141 : memref<1x128xf32, #tpu.memory_space<any>>) dst(%142 : memref<1x128xf32, #tpu.memory_space<vmem>>)
    %c8_i32_89 = arith.constant 8 : i32
    %c0_i32_90 = arith.constant 0 : i32
    %c0_i32_91 = arith.constant 0 : i32
    %c0_i32_92 = arith.constant 0 : i32
    %145 = tpu.memref_slice %arg3[%c0_i32_91, %c0_i32_92] : memref<64x128xf32, #tpu.memory_space<any>> -> memref<1x128xf32, #tpu.memory_space<any>>
    %c0_i32_93 = arith.constant 0 : i32
    %146 = tpu.memref_slice %arg6[%c8_i32_89, %c0_i32_93] : memref<16x128xf32, #tpu.memory_space<vmem>> -> memref<1x128xf32, #tpu.memory_space<vmem>>
    %147 = tpu.memref_slice %arg7[%c0_i32_90] : memref<1x!tpu.dma_semaphore, #tpu.memory_space<semaphore_mem>> -> memref<1x!tpu.dma_semaphore, #tpu.memory_space<semaphore_mem>>
    %148 = tpu.memref_squeeze %147 : memref<1x!tpu.dma_semaphore, #tpu.memory_space<semaphore_mem>> -> memref<!tpu.dma_semaphore, #tpu.memory_space<semaphore_mem>>
    tpu.wait_dma2 semaphore(%148 : memref<!tpu.dma_semaphore, #tpu.memory_space<semaphore_mem>>) src(%145 : memref<1x128xf32, #tpu.memory_space<any>>) dst(%146 : memref<1x128xf32, #tpu.memory_space<vmem>>)
    %c9_i32_94 = arith.constant 9 : i32
    %c0_i32_95 = arith.constant 0 : i32
    %c0_i32_96 = arith.constant 0 : i32
    %c0_i32_97 = arith.constant 0 : i32
    %149 = tpu.memref_slice %arg3[%c0_i32_96, %c0_i32_97] : memref<64x128xf32, #tpu.memory_space<any>> -> memref<1x128xf32, #tpu.memory_space<any>>
    %c0_i32_98 = arith.constant 0 : i32
    %150 = tpu.memref_slice %arg6[%c9_i32_94, %c0_i32_98] : memref<16x128xf32, #tpu.memory_space<vmem>> -> memref<1x128xf32, #tpu.memory_space<vmem>>
    %151 = tpu.memref_slice %arg7[%c0_i32_95] : memref<1x!tpu.dma_semaphore, #tpu.memory_space<semaphore_mem>> -> memref<1x!tpu.dma_semaphore, #tpu.memory_space<semaphore_mem>>
    %152 = tpu.memref_squeeze %151 : memref<1x!tpu.dma_semaphore, #tpu.memory_space<semaphore_mem>> -> memref<!tpu.dma_semaphore, #tpu.memory_space<semaphore_mem>>
    tpu.wait_dma2 semaphore(%152 : memref<!tpu.dma_semaphore, #tpu.memory_space<semaphore_mem>>) src(%149 : memref<1x128xf32, #tpu.memory_space<any>>) dst(%150 : memref<1x128xf32, #tpu.memory_space<vmem>>)
    %c10_i32_99 = arith.constant 10 : i32
    %c0_i32_100 = arith.constant 0 : i32
    %c0_i32_101 = arith.constant 0 : i32
    %c0_i32_102 = arith.constant 0 : i32
    %153 = tpu.memref_slice %arg3[%c0_i32_101, %c0_i32_102] : memref<64x128xf32, #tpu.memory_space<any>> -> memref<1x128xf32, #tpu.memory_space<any>>
    %c0_i32_103 = arith.constant 0 : i32
    %154 = tpu.memref_slice %arg6[%c10_i32_99, %c0_i32_103] : memref<16x128xf32, #tpu.memory_space<vmem>> -> memref<1x128xf32, #tpu.memory_space<vmem>>
    %155 = tpu.memref_slice %arg7[%c0_i32_100] : memref<1x!tpu.dma_semaphore, #tpu.memory_space<semaphore_mem>> -> memref<1x!tpu.dma_semaphore, #tpu.memory_space<semaphore_mem>>
    %156 = tpu.memref_squeeze %155 : memref<1x!tpu.dma_semaphore, #tpu.memory_space<semaphore_mem>> -> memref<!tpu.dma_semaphore, #tpu.memory_space<semaphore_mem>>
    tpu.wait_dma2 semaphore(%156 : memref<!tpu.dma_semaphore, #tpu.memory_space<semaphore_mem>>) src(%153 : memref<1x128xf32, #tpu.memory_space<any>>) dst(%154 : memref<1x128xf32, #tpu.memory_space<vmem>>)
    %c11_i32_104 = arith.constant 11 : i32
    %c0_i32_105 = arith.constant 0 : i32
    %c0_i32_106 = arith.constant 0 : i32
    %c0_i32_107 = arith.constant 0 : i32
    %157 = tpu.memref_slice %arg3[%c0_i32_106, %c0_i32_107] : memref<64x128xf32, #tpu.memory_space<any>> -> memref<1x128xf32, #tpu.memory_space<any>>
    %c0_i32_108 = arith.constant 0 : i32
    %158 = tpu.memref_slice %arg6[%c11_i32_104, %c0_i32_108] : memref<16x128xf32, #tpu.memory_space<vmem>> -> memref<1x128xf32, #tpu.memory_space<vmem>>
    %159 = tpu.memref_slice %arg7[%c0_i32_105] : memref<1x!tpu.dma_semaphore, #tpu.memory_space<semaphore_mem>> -> memref<1x!tpu.dma_semaphore, #tpu.memory_space<semaphore_mem>>
    %160 = tpu.memref_squeeze %159 : memref<1x!tpu.dma_semaphore, #tpu.memory_space<semaphore_mem>> -> memref<!tpu.dma_semaphore, #tpu.memory_space<semaphore_mem>>
    tpu.wait_dma2 semaphore(%160 : memref<!tpu.dma_semaphore, #tpu.memory_space<semaphore_mem>>) src(%157 : memref<1x128xf32, #tpu.memory_space<any>>) dst(%158 : memref<1x128xf32, #tpu.memory_space<vmem>>)
    %c12_i32_109 = arith.constant 12 : i32
    %c0_i32_110 = arith.constant 0 : i32
    %c0_i32_111 = arith.constant 0 : i32
    %c0_i32_112 = arith.constant 0 : i32
    %161 = tpu.memref_slice %arg3[%c0_i32_111, %c0_i32_112] : memref<64x128xf32, #tpu.memory_space<any>> -> memref<1x128xf32, #tpu.memory_space<any>>
    %c0_i32_113 = arith.constant 0 : i32
    %162 = tpu.memref_slice %arg6[%c12_i32_109, %c0_i32_113] : memref<16x128xf32, #tpu.memory_space<vmem>> -> memref<1x128xf32, #tpu.memory_space<vmem>>
    %163 = tpu.memref_slice %arg7[%c0_i32_110] : memref<1x!tpu.dma_semaphore, #tpu.memory_space<semaphore_mem>> -> memref<1x!tpu.dma_semaphore, #tpu.memory_space<semaphore_mem>>
    %164 = tpu.memref_squeeze %163 : memref<1x!tpu.dma_semaphore, #tpu.memory_space<semaphore_mem>> -> memref<!tpu.dma_semaphore, #tpu.memory_space<semaphore_mem>>
    tpu.wait_dma2 semaphore(%164 : memref<!tpu.dma_semaphore, #tpu.memory_space<semaphore_mem>>) src(%161 : memref<1x128xf32, #tpu.memory_space<any>>) dst(%162 : memref<1x128xf32, #tpu.memory_space<vmem>>)
    %c13_i32_114 = arith.constant 13 : i32
    %c0_i32_115 = arith.constant 0 : i32
    %c0_i32_116 = arith.constant 0 : i32
    %c0_i32_117 = arith.constant 0 : i32
    %165 = tpu.memref_slice %arg3[%c0_i32_116, %c0_i32_117] : memref<64x128xf32, #tpu.memory_space<any>> -> memref<1x128xf32, #tpu.memory_space<any>>
    %c0_i32_118 = arith.constant 0 : i32
    %166 = tpu.memref_slice %arg6[%c13_i32_114, %c0_i32_118] : memref<16x128xf32, #tpu.memory_space<vmem>> -> memref<1x128xf32, #tpu.memory_space<vmem>>
    %167 = tpu.memref_slice %arg7[%c0_i32_115] : memref<1x!tpu.dma_semaphore, #tpu.memory_space<semaphore_mem>> -> memref<1x!tpu.dma_semaphore, #tpu.memory_space<semaphore_mem>>
    %168 = tpu.memref_squeeze %167 : memref<1x!tpu.dma_semaphore, #tpu.memory_space<semaphore_mem>> -> memref<!tpu.dma_semaphore, #tpu.memory_space<semaphore_mem>>
    tpu.wait_dma2 semaphore(%168 : memref<!tpu.dma_semaphore, #tpu.memory_space<semaphore_mem>>) src(%165 : memref<1x128xf32, #tpu.memory_space<any>>) dst(%166 : memref<1x128xf32, #tpu.memory_space<vmem>>)
    %c14_i32_119 = arith.constant 14 : i32
    %c0_i32_120 = arith.constant 0 : i32
    %c0_i32_121 = arith.constant 0 : i32
    %c0_i32_122 = arith.constant 0 : i32
    %169 = tpu.memref_slice %arg3[%c0_i32_121, %c0_i32_122] : memref<64x128xf32, #tpu.memory_space<any>> -> memref<1x128xf32, #tpu.memory_space<any>>
    %c0_i32_123 = arith.constant 0 : i32
    %170 = tpu.memref_slice %arg6[%c14_i32_119, %c0_i32_123] : memref<16x128xf32, #tpu.memory_space<vmem>> -> memref<1x128xf32, #tpu.memory_space<vmem>>
    %171 = tpu.memref_slice %arg7[%c0_i32_120] : memref<1x!tpu.dma_semaphore, #tpu.memory_space<semaphore_mem>> -> memref<1x!tpu.dma_semaphore, #tpu.memory_space<semaphore_mem>>
    %172 = tpu.memref_squeeze %171 : memref<1x!tpu.dma_semaphore, #tpu.memory_space<semaphore_mem>> -> memref<!tpu.dma_semaphore, #tpu.memory_space<semaphore_mem>>
    tpu.wait_dma2 semaphore(%172 : memref<!tpu.dma_semaphore, #tpu.memory_space<semaphore_mem>>) src(%169 : memref<1x128xf32, #tpu.memory_space<any>>) dst(%170 : memref<1x128xf32, #tpu.memory_space<vmem>>)
    %c15_i32_124 = arith.constant 15 : i32
    %c0_i32_125 = arith.constant 0 : i32
    %c0_i32_126 = arith.constant 0 : i32
    %c0_i32_127 = arith.constant 0 : i32
    %173 = tpu.memref_slice %arg3[%c0_i32_126, %c0_i32_127] : memref<64x128xf32, #tpu.memory_space<any>> -> memref<1x128xf32, #tpu.memory_space<any>>
    %c0_i32_128 = arith.constant 0 : i32
    %174 = tpu.memref_slice %arg6[%c15_i32_124, %c0_i32_128] : memref<16x128xf32, #tpu.memory_space<vmem>> -> memref<1x128xf32, #tpu.memory_space<vmem>>
    %175 = tpu.memref_slice %arg7[%c0_i32_125] : memref<1x!tpu.dma_semaphore, #tpu.memory_space<semaphore_mem>> -> memref<1x!tpu.dma_semaphore, #tpu.memory_space<semaphore_mem>>
    %176 = tpu.memref_squeeze %175 : memref<1x!tpu.dma_semaphore, #tpu.memory_space<semaphore_mem>> -> memref<!tpu.dma_semaphore, #tpu.memory_space<semaphore_mem>>
    tpu.wait_dma2 semaphore(%176 : memref<!tpu.dma_semaphore, #tpu.memory_space<semaphore_mem>>) src(%173 : memref<1x128xf32, #tpu.memory_space<any>>) dst(%174 : memref<1x128xf32, #tpu.memory_space<vmem>>)
    %c16_i32_129 = arith.constant 16 : i32
    %c0 = arith.constant 0 : index
    %c0_130 = arith.constant 0 : index
    %177 = vector.load %arg6[%c0, %c0_130] : memref<16x128xf32, #tpu.memory_space<vmem>>, vector<16x128xf32>
    %c0_131 = arith.constant 0 : index
    %c0_132 = arith.constant 0 : index
    %178 = vector.load %arg4[%c0_131, %c0_132] : memref<8x128xf32, #tpu.memory_space<vmem>>, vector<8x128xf32>
    %179 = tpu.concatenate %178, %178 in 0 : vector<8x128xf32>, vector<8x128xf32> -> vector<16x128xf32>
    %180 = arith.addf %177, %179 : vector<16x128xf32>
    %c0_133 = arith.constant 0 : index
    %c0_134 = arith.constant 0 : index
    %181 = vector.load %arg5[%c0_133, %c0_134] : memref<16x128xf32, #tpu.memory_space<vmem>>, vector<16x128xf32>
    tpu.vector_store %arg5[%c0_133, %c0_134], %180 {strides = array<i32>} : memref<16x128xf32, #tpu.memory_space<vmem>>, vector<16x128xf32>,
    return
  }
  func.func @transform_1(%arg0: i32, %arg1: memref<32xi32, #tpu.memory_space<smem>>, %arg2: memref<1xi32, #tpu.memory_space<smem>>) -> (i32, i32) {
    %c0_i32 = arith.constant 0 : i32
    %c0_i32_0 = arith.constant 0 : i32
    %c0_i32_1 = arith.constant 0 : i32
    return %c0_i32, %c0_i32_0 : i32, i32
  }
  func.func @transform_2(%arg0: i32, %arg1: memref<32xi32, #tpu.memory_space<smem>>, %arg2: memref<1xi32, #tpu.memory_space<smem>>) -> (i32, i32) {
    %c0_i32 = arith.constant 0 : i32
    %c0_i32_0 = arith.constant 0 : i32
    return %arg0, %c0_i32 : i32, i32
  }
}

</mosaic_0001>

<bundles_post_ra>
// kernel: tpu_custom_call.1
= control target key start
LH: loop header
LB: loop body
LE: loop exit
PB: predicated region body
PF: predicated region fallthrough
CT: control target
= control target key end

     0   :  { %s1504_s0 = inlined_call_operand.vmem [shape: s32[32], index: 0, kind: input, shape index: {}]   ;;  %s1505_s1 = inlined_call_operand.<no memory space> [shape: s32[1], index: 1, kind: input, shape index: {}]   ;;  %s1506_s2 = inlined_call_operand.hbm [shape: f32[64,128], index: 2, kind: input, shape index: {}]   ;;  %s1507_s3 = inlined_call_operand.hbm [shape: f32[8,128], index: 3, kind: input, shape index: {}]   ;;  %s1508_s4 = inlined_call_operand.hbm [shape: f32[32,128], index: 4, kind: output, shape index: {}]  }
   0x1   :  { %1511 = sst [smem:[#allocation51_spill]] %s1507_s3  ;;  %s9_s17 = sshll.u32 %s1504_s0, 4  ;;  %s10_s17 = int_to_ptr.vmem [resolvable:$true] %s9_s17 }
   0x2   :  { %s627_s18 = scalar_lea.vmem %s10_s17, 16  ;;  %p632_p1 = scmp.lt.s32.totalorder %s10_s17, %s10_s17 }
   0x3   :  { %p628_p0 = scmp.ne.s32.totalorder %s10_s17, %s627_s18  ;;  %p633_p2 = scmp.lt.s32.totalorder %s627_s18, %s627_s18 }
   0x5   :  { %p634_p3 = por %p633_p2, %p632_p1 }
   0x7   :  { %p635_p4 = pnand %p634_p3, %p628_p0 }
   0x9   :  { %638 = shalt.err (!%p635_p4)  }
   0xa   :  { %s1087_s1 = smov [#allocation5]  }
   0xb   :  { %12 = dma.vmem_to_smem %s10_s17, 16, %s1087_s1, [#allocation4] }
   0xc   :  { %1059 = dma.done.wait [#allocation4], 16 }
   0xd   :  { %1060 = vsyncadd [#allocation4], 4294967280 }
   0xe   :  { %15 = sfence }
   0xf   :  { %16 = vsyncpa [#allocation8], 0 }
  0x10   :  { %17 = vsyncpa [#allocation9], 0 }
  0x11   :  { %19 = vsyncpa [#allocation9 + $0x1], 0  ;;  %s1136_s19 = smov 0   ;;  %s1138_s20 = smov 0  }
  0x12   :  { %s1140_s0 = smov 0   ;;  %s1142_s21 = smov 0  }
  0x13 LB: > { %1512 = sst [smem:[#allocation49_spill]] %s1081_s0  ;;  %s1157_s22 = sadd.s32 4294967295, %s1085_s21   ;;  %s1085_s21 = sphi %s1142_s21, %s1524_s21   ;;  %s1081_s0 = sphi %s1140_s0, %s1521_s0   ;;  %s1077_s20 = sphi %s1138_s20, %s1523_s20   ;;  %s1073_s19 = sphi %s1136_s19, %s1522_s19  }
  0x14   : > { %s528_s23 = sadd.s32 4294967294, %s1085_s21   ;;  %s1161_s24 = sadd.s32 1, %s1085_s21  }
  0x15   : > { %s53_s25 = sadd.s32 1, %s1081_s0  ;;  %s50_s26 = ssub.s32 %s1085_s21, %s1161_s24 }
  0x16   : > { %p63_p5 = scmp.ne.s32.totalorder %s1081_s0, %s1077_s20  ;;  %p51_p6 = scmp.eq.s32.totalorder %s50_s26, 0 }
  0x17   : > { %p64_p7 = scmp.eq.s32.totalorder %s1157_s22, 1  ;;  %p69_p8 = scmp.ne.s32.totalorder %s1077_s20, %s1073_s19 }
  0x18   : > { %p70_p9 = scmp.eq.s32.totalorder %s528_s23, 1  ;;  %p529_p12 = scmp.ge.s32.totalorder %s1085_s21, 1 }
  0x19   : > { %s1172_s27 = scalar_select %p51_p6, %s1081_s0, %s53_s25  }
  0x1a   : > { %p1174_p10 = por %p64_p7, %p63_p5  ;;  %p1178_p11 = por %p70_p9, %p69_p8 }
  0x1b   : > { %1513 = sst [smem:[#allocation50_spill]] %s1172_s27  ;;  %p77_p13 = scmp.lt.s32.totalorder %s1085_s21, 3 }
  0x1c   : > { %s1515_s29 = scalar_select %p1178_p11, 1, 0 }
  0x1d   : > { %p572_p0 = scmp.eq.s32.totalorder %s1157_s22, 0  ;;  %p1185_p1 = pnand %p529_p12, %p77_p13 }
  0x1e   : > { %s1088_s5 = smov [#allocation7]  }
  0x1f   : > { %s90_s6 = sshll.u32 %s1088_s5, 4  ;;  %p564_p2 = pneg %p1185_p1  ;;  %s91_s6 = int_to_ptr.vmem [resolvable:$true] %s90_s6 }
  0x20   : > { %s650_s7 = scalar_lea.vmem %s91_s6, 128  ;;  %p658_p8 = scmp.lt.s32.totalorder %s91_s6, %s91_s6 }
  0x21   : > { %p565_p3 = pnand %p572_p0, %p564_p2  ;;  %p651_p5 = scmp.ne.s32.totalorder %s91_s6, %s650_s7 }
  0x22   : > { %p659_p9 = scmp.lt.s32.totalorder %s650_s7, %s650_s7 }
  0x23   : > { %p641_p4 = pneg %p565_p3 }
  0x24   : > { %p660_p11 = por %p659_p9, %p658_p8 }
  0x25   : > { %p653_p6 = pnand %p651_p5, %p641_p4 }
  0x27   : > { %p654_p7 = pneg %p653_p6 }
  0x29   : > { %p661_p12 = pnand %p660_p11, %p654_p7 }
  0x2b   : > { %664 = shalt.err (!%p661_p12)
}
  0x2c   : > { %s1517_s3 = sld [smem:[#allocation51_spill]] }
  0x2e   : > { %103 = sbr.rel (%p1185_p1) target bundleno = 408 (0x198), region = 24 }
  0x32   : > { %567 = dma.hbm_to_vmem [thread:$0]  (!%p565_p3), %s1517_s3, 128, %s91_s6, [#allocation8]  }
  0x33   : > { %1062 = dma.done.wait (%p572_p0), [#allocation8], 128  }
  0x34   : > { %1064 = vsyncadd (%p572_p0), [#allocation8], 4294967168  ;;  %s1509_s10 = sand.u32 1, %s1077_s20   ;;  %s1204_s11 = sshll.u32 %s1157_s22, 4 }
  0x35   : > { %s1208_s12 = sshll.u32 %s1509_s10, 4  ;;  %s120_s13 = sld [smem:[#allocation5 + %s1204_s11]] }
  0x36   : > { %s1089_s14 = smov [#allocation2]   ;;  %s134_s16 = sadd.s32 1, %s1204_s11 }
  0x37   : > { %s130_s15 = sshll.u32 %s1089_s14, 4  ;;  %s1214_s17 = sld [smem:[#allocation5 + %s134_s16]]  ;;  %s1212_s15 = int_to_ptr.vmem [resolvable:$true] %s130_s15 }
  0x38   : > { %s150_s18 = sadd.s32 2, %s1204_s11  ;;  %s1090_s1 = smov [#allocation2 + $0x1]  }
  0x39   : > { %s146_s23 = sshll.u32 %s1090_s1, 4  ;;  %s1217_s25 = sld [smem:[#allocation5 + %s150_s18]]  ;;  %s1219_s23 = int_to_ptr.vmem [resolvable:$true] %s146_s23 }
  0x3a   : > { %s1227_s14 = scalar_lea.hbm %s1506_s2, 1024 }
  0x3b   : > { %s535_s26 = sshll.u32 %s120_s13, 4 }
  0x3c   : > { %s122_s6 = scalar_lea.hbm %s1506_s2, %s535_s26 }
  0x3d   : > { %s665_s7 = scalar_lea.hbm %s122_s6, 16  ;;  %p668_p13 = scmp.lt.s32.totalorder %s122_s6, %s1506_s2 }
  0x3e   : > { %p666_p11 = scmp.ne.s32.totalorder %s122_s6, %s665_s7  ;;  %p669_p0 = scmp.lt.s32.totalorder %s1227_s14, %s665_s7 }
  0x40   : > { %p670_p1 = por %p669_p0, %p668_p13 }
  0x42   : > { %p671_p2 = pnand %p670_p1, %p666_p11 }
  0x44   : > { %674 = shalt.err (!%p671_p2)  }
  0x45   : > { %s675_s13 = scalar_lea.vmem %s1212_s15, 16  ;;  %s1236_s18 = scalar_lea.vmem %s1212_s15, 256 }
  0x46   : > { %p676_p3 = scmp.ne.s32.totalorder %s1212_s15, %s675_s13  ;;  %p680_p4 = scmp.lt.s32.totalorder %s1212_s15, %s1212_s15 }
  0x47   : > { %p681_p5 = scmp.lt.s32.totalorder %s1236_s18, %s675_s13 }
  0x49   : > { %p682_p6 = por %p681_p5, %p680_p4 }
  0x4b   : > { %p683_p7 = pnand %p682_p6, %p676_p3 }
  0x4d   : > { %686 = shalt.err (!%p683_p7)  }
  0x4e   : > { %133 = dma.hbm_to_vmem [thread:$0]  %s122_s6, 16, %s1212_s15, [#allocation3] }
  0x4f   : > { %s536_s10 = sshll.u32 %s1214_s17, 4  ;;  %s1091_s1 = smov [#allocation2 + $0x2]  }
  0x50   : > { %s162_s26 = sshll.u32 %s1091_s1, 4  ;;  %s137_s7 = scalar_lea.hbm %s1506_s2, %s536_s10  ;;  %s1246_s26 = int_to_ptr.vmem [resolvable:$true] %s162_s26 }
  0x51   : > { %s687_s8 = scalar_lea.hbm %s137_s7, 16  ;;  %p690_p9 = scmp.lt.s32.totalorder %s137_s7, %s1506_s2 }
  0x52   : > { %p688_p8 = scmp.ne.s32.totalorder %s137_s7, %s687_s8  ;;  %p691_p12 = scmp.lt.s32.totalorder %s1227_s14, %s687_s8 }
  0x54   : > { %p692_p11 = por %p691_p12, %p690_p9 }
  0x56   : > { %p693_p13 = pnand %p692_p11, %p688_p8 }
  0x58   : > { %696 = shalt.err (!%p693_p13)  }
  0x59   : > { %s697_s17 = scalar_lea.vmem %s1219_s23, 16  ;;  %p702_p1 = scmp.lt.s32.totalorder %s1219_s23, %s1212_s15 }
  0x5a   : > { %p698_p0 = scmp.ne.s32.totalorder %s1219_s23, %s697_s17  ;;  %p703_p2 = scmp.lt.s32.totalorder %s1236_s18, %s697_s17 }
  0x5c   : > { %p704_p3 = por %p703_p2, %p702_p1 }
  0x5e   : > { %p705_p4 = pnand %p704_p3, %p698_p0 }
  0x60   : > { %708 = shalt.err (!%p705_p4)  }
  0x61   : > { %149 = dma.hbm_to_vmem [thread:$0]  %s137_s7, 16, %s1219_s23, [#allocation3] }
  0x62   : > { %s537_s6 = sshll.u32 %s1217_s25, 4  ;;  %s166_s13 = sadd.s32 3, %s1204_s11 }
  0x63   : > { %s153_s30 = scalar_lea.hbm %s1506_s2, %s537_s6  ;;  %s167_s5 = sld [smem:[#allocation5 + %s166_s13]] }
  0x64   : > { %s709_s8 = scalar_lea.hbm %s153_s30, 16  ;;  %p712_p6 = scmp.lt.s32.totalorder %s153_s30, %s1506_s2 }
  0x65   : > { %p710_p5 = scmp.ne.s32.totalorder %s153_s30, %s709_s8  ;;  %p713_p7 = scmp.lt.s32.totalorder %s1227_s14, %s709_s8 }
  0x67   : > { %p714_p8 = por %p713_p7, %p712_p6 }
  0x69   : > { %p715_p9 = pnand %p714_p8, %p710_p5 }
  0x6b   : > { %718 = shalt.err (!%p715_p9)  }
  0x6c   : > { %s719_s23 = scalar_lea.vmem %s1246_s26, 16  ;;  %p724_p11 = scmp.lt.s32.totalorder %s1246_s26, %s1212_s15 }
  0x6d   : > { %p720_p12 = scmp.ne.s32.totalorder %s1246_s26, %s719_s23  ;;  %p725_p13 = scmp.lt.s32.totalorder %s1236_s18, %s719_s23 }
  0x6f   : > { %p726_p0 = por %p725_p13, %p724_p11 }
  0x71   : > { %p727_p1 = pnand %p726_p0, %p720_p12 }
  0x73   : > { %730 = shalt.err (!%p727_p1)  }
  0x74   : > { %165 = dma.hbm_to_vmem [thread:$0]  %s153_s30, 16, %s1246_s26, [#allocation3] }
  0x75   : > { %s182_s25 = sadd.s32 4, %s1204_s11  ;;  %s1092_s7 = smov [#allocation2 + $0x3]  }
  0x76   : > { %s178_s17 = sshll.u32 %s1092_s7, 4  ;;  %s183_s6 = sld [smem:[#allocation5 + %s182_s25]]  ;;  %s179_s17 = int_to_ptr.vmem [resolvable:$true] %s178_s17 }
  0x77   : > { %s1093_s13 = smov [#allocation2 + $0x4]   ;;  %s198_s1 = sadd.s32 5, %s1204_s11 }
  0x78   : > { %s194_s10 = sshll.u32 %s1093_s13, 4  ;;  %s538_s8 = sshll.u32 %s167_s5, 4  ;;  %s1275_s10 = int_to_ptr.vmem [resolvable:$true] %s194_s10 }
  0x79   : > { %s169_s23 = scalar_lea.hbm %s1506_s2, %s538_s8  ;;  %s1280_s3 = sld [smem:[#allocation5 + %s198_s1]] }
  0x7a   : > { %s731_s27 = scalar_lea.hbm %s169_s23, 16  ;;  %p734_p3 = scmp.lt.s32.totalorder %s169_s23, %s1506_s2 }
  0x7b   : > { %p732_p2 = scmp.ne.s32.totalorder %s169_s23, %s731_s27  ;;  %p735_p4 = scmp.lt.s32.totalorder %s1227_s14, %s731_s27 }
  0x7d   : > { %p736_p5 = por %p735_p4, %p734_p3 }
  0x7f   : > { %p737_p6 = pnand %p736_p5, %p732_p2 }
  0x81   : > { %740 = shalt.err (!%p737_p6)  }
  0x82   : > { %s741_s25 = scalar_lea.vmem %s179_s17, 16  ;;  %p746_p8 = scmp.lt.s32.totalorder %s179_s17, %s1212_s15 }
  0x83   : > { %p742_p7 = scmp.ne.s32.totalorder %s179_s17, %s741_s25  ;;  %p747_p9 = scmp.lt.s32.totalorder %s1236_s18, %s741_s25 }
  0x85   : > { %p748_p12 = por %p747_p9, %p746_p8 }
  0x87   : > { %p749_p11 = pnand %p748_p12, %p742_p7 }
  0x89   : > { %752 = shalt.err (!%p749_p11)  }
  0x8a   : > { %181 = dma.hbm_to_vmem [thread:$0]  %s169_s23, 16, %s179_s17, [#allocation3] }
  0x8b   : > { %s539_s5 = sshll.u32 %s183_s6, 4  ;;  %s1094_s27 = smov [#allocation2 + $0x5]  }
  0x8c   : > { %s185_s1 = scalar_lea.hbm %s1506_s2, %s539_s5  ;;  %s210_s8 = sshll.u32 %s1094_s27, 4  ;;  %s211_s8 = int_to_ptr.vmem [resolvable:$true] %s210_s8 }
  0x8d   : > { %s753_s9 = scalar_lea.hbm %s185_s1, 16  ;;  %p756_p0 = scmp.lt.s32.totalorder %s185_s1, %s1506_s2 }
  0x8e   : > { %p754_p13 = scmp.ne.s32.totalorder %s185_s1, %s753_s9  ;;  %p757_p1 = scmp.lt.s32.totalorder %s1227_s14, %s753_s9 }
  0x90   : > { %p758_p2 = por %p757_p1, %p756_p0 }
  0x92   : > { %p759_p3 = pnand %p758_p2, %p754_p13 }
  0x94   : > { %762 = shalt.err (!%p759_p3)  }
  0x95   : > { %s763_s17 = scalar_lea.vmem %s1275_s10, 16  ;;  %p768_p5 = scmp.lt.s32.totalorder %s1275_s10, %s1212_s15 }
  0x96   : > { %p764_p4 = scmp.ne.s32.totalorder %s1275_s10, %s763_s17  ;;  %p769_p6 = scmp.lt.s32.totalorder %s1236_s18, %s763_s17 }
  0x98   : > { %p770_p7 = por %p769_p6, %p768_p5 }
  0x9a   : > { %p771_p8 = pnand %p770_p7, %p764_p4 }
  0x9c   : > { %774 = shalt.err (!%p771_p8)  }
  0x9d   : > { %197 = dma.hbm_to_vmem [thread:$0]  %s185_s1, 16, %s1275_s10, [#allocation3] }
  0x9e   : > { %s214_s6 = sadd.s32 6, %s1204_s11  ;;  %s540_s23 = sshll.u32 %s1280_s3, 4 }
  0x9f   : > { %s215_s30 = sld [smem:[#allocation5 + %s214_s6]]  ;;  %s201_s7 = scalar_lea.hbm %s1506_s2, %s540_s23 }
  0xa0   : > { %s775_s13 = scalar_lea.hbm %s201_s7, 16  ;;  %p778_p12 = scmp.lt.s32.totalorder %s201_s7, %s1506_s2 }
  0xa1   : > { %p776_p9 = scmp.ne.s32.totalorder %s201_s7, %s775_s13  ;;  %p779_p11 = scmp.lt.s32.totalorder %s1227_s14, %s775_s13 }
  0xa3   : > { %p780_p13 = por %p779_p11, %p778_p12 }
  0xa5   : > { %p781_p0 = pnand %p780_p13, %p776_p9 }
  0xa7   : > { %784 = shalt.err (!%p781_p0)  }
  0xa8   : > { %s785_s16 = scalar_lea.vmem %s211_s8, 16  ;;  %p790_p2 = scmp.lt.s32.totalorder %s211_s8, %s1212_s15 }
  0xa9   : > { %p786_p1 = scmp.ne.s32.totalorder %s211_s8, %s785_s16  ;;  %p791_p3 = scmp.lt.s32.totalorder %s1236_s18, %s785_s16 }
  0xab   : > { %p792_p4 = por %p791_p3, %p790_p2 }
  0xad   : > { %p793_p5 = pnand %p792_p4, %p786_p1 }
  0xaf   : > { %796 = shalt.err (!%p793_p5)  }
  0xb0   : > { %213 = dma.hbm_to_vmem [thread:$0]  %s201_s7, 16, %s211_s8, [#allocation3] }
  0xb1   : > { %s1095_s3 = smov [#allocation2 + $0x6]   ;;  %s230_s1 = sadd.s32 7, %s1204_s11 }
  0xb2   : > { %s226_s10 = sshll.u32 %s1095_s3, 4  ;;  %s231_s26 = sld [smem:[#allocation5 + %s230_s1]]  ;;  %s227_s10 = int_to_ptr.vmem [resolvable:$true] %s226_s10 }
  0xb3   : > { %s246_s17 = sadd.s32 8, %s1204_s11  ;;  %s541_s6 = sshll.u32 %s215_s30, 4 }
  0xb4   : > { %s1096_s23 = smov [#allocation2 + $0x7]   ;;  %s217_s27 = scalar_lea.hbm %s1506_s2, %s541_s6 }
  0xb5   : > { %s242_s25 = sshll.u32 %s1096_s23, 4  ;;  %s797_s9 = scalar_lea.hbm %s217_s27, 16  ;;  %s1317_s25 = int_to_ptr.vmem [resolvable:$true] %s242_s25 }
  0xb6   : > { %p798_p6 = scmp.ne.s32.totalorder %s217_s27, %s797_s9  ;;  %p800_p7 = scmp.lt.s32.totalorder %s217_s27, %s1506_s2 }
  0xb7   : > { %p801_p8 = scmp.lt.s32.totalorder %s1227_s14, %s797_s9 }
  0xb9   : > { %p802_p9 = por %p801_p8, %p800_p7 }
  0xbb   : > { %p803_p12 = pnand %p802_p9, %p798_p6 }
  0xbd   : > { %806 = shalt.err (!%p803_p12)  }
  0xbe   : > { %s807_s16 = scalar_lea.vmem %s227_s10, 16  ;;  %p812_p13 = scmp.lt.s32.totalorder %s227_s10, %s1212_s15 }
  0xbf   : > { %p808_p11 = scmp.ne.s32.totalorder %s227_s10, %s807_s16  ;;  %p813_p0 = scmp.lt.s32.totalorder %s1236_s18, %s807_s16 }
  0xc1   : > { %p814_p1 = por %p813_p0, %p812_p13 }
  0xc3   : > { %p815_p2 = pnand %p814_p1, %p808_p11 }
  0xc5   : > { %818 = shalt.err (!%p815_p2)  }
  0xc6   : > { %229 = dma.hbm_to_vmem [thread:$0]  %s217_s27, 16, %s227_s10, [#allocation3] }
  0xc7   : > { %s247_s30 = sld [smem:[#allocation5 + %s246_s17]]  ;;  %s542_s3 = sshll.u32 %s231_s26, 4 }
  0xc8   : > { %s1097_s1 = smov [#allocation2 + $0x8]   ;;  %s233_s13 = scalar_lea.hbm %s1506_s2, %s542_s3 }
  0xc9   : > { %s258_s6 = sshll.u32 %s1097_s1, 4  ;;  %s819_s9 = scalar_lea.hbm %s233_s13, 16  ;;  %s1328_s6 = int_to_ptr.vmem [resolvable:$true] %s258_s6 }
  0xca   : > { %p820_p3 = scmp.ne.s32.totalorder %s233_s13, %s819_s9  ;;  %p822_p4 = scmp.lt.s32.totalorder %s233_s13, %s1506_s2 }
  0xcb   : > { %p823_p5 = scmp.lt.s32.totalorder %s1227_s14, %s819_s9 }
  0xcd   : > { %p824_p6 = por %p823_p5, %p822_p4 }
  0xcf   : > { %p825_p7 = pnand %p824_p6, %p820_p3 }
  0xd1   : > { %828 = shalt.err (!%p825_p7)  }
  0xd2   : > { %s829_s10 = scalar_lea.vmem %s1317_s25, 16  ;;  %p834_p9 = scmp.lt.s32.totalorder %s1317_s25, %s1212_s15 }
  0xd3   : > { %p830_p8 = scmp.ne.s32.totalorder %s1317_s25, %s829_s10  ;;  %p835_p12 = scmp.lt.s32.totalorder %s1236_s18, %s829_s10 }
  0xd5   : > { %p836_p11 = por %p835_p12, %p834_p9 }
  0xd7   : > { %p837_p13 = pnand %p836_p11, %p830_p8 }
  0xd9   : > { %840 = shalt.err (!%p837_p13)  }
  0xda   : > { %245 = dma.hbm_to_vmem [thread:$0]  %s233_s13, 16, %s1317_s25, [#allocation3] }
  0xdb   : > { %s262_s26 = sadd.s32 9, %s1204_s11  ;;  %s1098_s27 = smov [#allocation2 + $0x9]  }
  0xdc   : > { %s1341_s17 = sld [smem:[#allocation5 + %s262_s26]]  ;;  %s274_s16 = sshll.u32 %s1098_s27, 4  ;;  %s1343_s16 = int_to_ptr.vmem [resolvable:$true] %s274_s16 }
  0xdd   : > { %s543_s3 = sshll.u32 %s247_s30, 4  ;;  %s278_s9 = sadd.s32 10, %s1204_s11 }
  0xde   : > { %s249_s5 = scalar_lea.hbm %s1506_s2, %s543_s3 }
  0xdf   : > { %s841_s8 = scalar_lea.hbm %s249_s5, 16  ;;  %p844_p1 = scmp.lt.s32.totalorder %s249_s5, %s1506_s2 }
  0xe0   : > { %p842_p0 = scmp.ne.s32.totalorder %s249_s5, %s841_s8  ;;  %p845_p2 = scmp.lt.s32.totalorder %s1227_s14, %s841_s8 }
  0xe2   : > { %p846_p3 = por %p845_p2, %p844_p1 }
  0xe4   : > { %p847_p4 = pnand %p846_p3, %p842_p0 }
  0xe6   : > { %850 = shalt.err (!%p847_p4)  }
  0xe7   : > { %s851_s25 = scalar_lea.vmem %s1328_s6, 16  ;;  %p856_p6 = scmp.lt.s32.totalorder %s1328_s6, %s1212_s15 }
  0xe8   : > { %p852_p5 = scmp.ne.s32.totalorder %s1328_s6, %s851_s25  ;;  %p857_p7 = scmp.lt.s32.totalorder %s1236_s18, %s851_s25 }
  0xea   : > { %p858_p8 = por %p857_p7, %p856_p6 }
  0xec   : > { %p859_p9 = pnand %p858_p8, %p852_p5 }
  0xee   : > { %862 = shalt.err (!%p859_p9)  }
  0xef   : > { %261 = dma.hbm_to_vmem [thread:$0]  %s249_s5, 16, %s1328_s6, [#allocation3] }
  0xf0   : > { %s279_s30 = sld [smem:[#allocation5 + %s278_s9]]  ;;  %s1099_s13 = smov [#allocation2 + $0xa]  }
  0xf1   : > { %s290_s26 = sshll.u32 %s1099_s13, 4  ;;  %s294_s27 = sadd.s32 11, %s1204_s11  ;;  %s1361_s26 = int_to_ptr.vmem [resolvable:$true] %s290_s26 }
  0xf2   : > { %s544_s3 = sshll.u32 %s1341_s17, 4  ;;  %s1366_s7 = sld [smem:[#allocation5 + %s294_s27]] }
  0xf3   : > { %s265_s8 = scalar_lea.hbm %s1506_s2, %s544_s3 }
  0xf4   : > { %s863_s10 = scalar_lea.hbm %s265_s8, 16  ;;  %p866_p11 = scmp.lt.s32.totalorder %s265_s8, %s1506_s2 }
  0xf5   : > { %p864_p12 = scmp.ne.s32.totalorder %s265_s8, %s863_s10  ;;  %p867_p13 = scmp.lt.s32.totalorder %s1227_s14, %s863_s10 }
  0xf7   : > { %p868_p0 = por %p867_p13, %p866_p11 }
  0xf9   : > { %p869_p1 = pnand %p868_p0, %p864_p12 }
  0xfb   : > { %872 = shalt.err (!%p869_p1)  }
  0xfc   : > { %s873_s6 = scalar_lea.vmem %s1343_s16, 16  ;;  %p878_p3 = scmp.lt.s32.totalorder %s1343_s16, %s1212_s15 }
  0xfd   : > { %p874_p2 = scmp.ne.s32.totalorder %s1343_s16, %s873_s6  ;;  %p879_p4 = scmp.lt.s32.totalorder %s1236_s18, %s873_s6 }
  0xff   : > { %p880_p5 = por %p879_p4, %p878_p3 }
 0x101   : > { %p881_p6 = pnand %p880_p5, %p874_p2 }
 0x103   : > { %884 = shalt.err (!%p881_p6)  }
 0x104   : > { %277 = dma.hbm_to_vmem [thread:$0]  %s265_s8, 16, %s1343_s16, [#allocation3] }
 0x105   : > { %s310_s0 = sadd.s32 12, %s1204_s11  ;;  %s545_s17 = sshll.u32 %s279_s30, 4 }
 0x106   : > { %s1100_s5 = smov [#allocation2 + $0xb]   ;;  %s281_s3 = scalar_lea.hbm %s1506_s2, %s545_s17 }
 0x107   : > { %s306_s9 = sshll.u32 %s1100_s5, 4  ;;  %s885_s1 = scalar_lea.hbm %s281_s3, 16  ;;  %s1382_s9 = int_to_ptr.vmem [resolvable:$true] %s306_s9 }
 0x108   : > { %p886_p7 = scmp.ne.s32.totalorder %s281_s3, %s885_s1  ;;  %p888_p8 = scmp.lt.s32.totalorder %s281_s3, %s1506_s2 }
 0x109   : > { %p889_p9 = scmp.lt.s32.totalorder %s1227_s14, %s885_s1 }
 0x10b   : > { %p890_p12 = por %p889_p9, %p888_p8 }
 0x10d   : > { %p891_p11 = pnand %p890_p12, %p886_p7 }
 0x10f   : > { %894 = shalt.err (!%p891_p11)  }
 0x110   : > { %s895_s16 = scalar_lea.vmem %s1361_s26, 16  ;;  %p900_p0 = scmp.lt.s32.totalorder %s1361_s26, %s1212_s15 }
 0x111   : > { %p896_p13 = scmp.ne.s32.totalorder %s1361_s26, %s895_s16  ;;  %p901_p1 = scmp.lt.s32.totalorder %s1236_s18, %s895_s16 }
 0x113   : > { %p902_p2 = por %p901_p1, %p900_p0 }
 0x115   : > { %p903_p3 = pnand %p902_p2, %p896_p13 }
 0x117   : > { %906 = shalt.err (!%p903_p3)  }
 0x118   : > { %293 = dma.hbm_to_vmem [thread:$0]  %s281_s3, 16, %s1361_s26, [#allocation3] }
 0x119   : > { %s546_s30 = sshll.u32 %s1366_s7, 4  ;;  %s311_s8 = sld [smem:[#allocation5 + %s310_s0]] }
 0x11a   : > { %s297_s17 = scalar_lea.hbm %s1506_s2, %s546_s30 }
 0x11b   : > { %s907_s5 = scalar_lea.hbm %s297_s17, 16  ;;  %p910_p5 = scmp.lt.s32.totalorder %s297_s17, %s1506_s2 }
 0x11c   : > { %p908_p4 = scmp.ne.s32.totalorder %s297_s17, %s907_s5  ;;  %p911_p6 = scmp.lt.s32.totalorder %s1227_s14, %s907_s5 }
 0x11e   : > { %p912_p7 = por %p911_p6, %p910_p5 }
 0x120   : > { %p913_p8 = pnand %p912_p7, %p908_p4 }
 0x122   : > { %916 = shalt.err (!%p913_p8)  }
 0x123   : > { %s917_s26 = scalar_lea.vmem %s1382_s9, 16  ;;  %p922_p12 = scmp.lt.s32.totalorder %s1382_s9, %s1212_s15 }
 0x124   : > { %p918_p9 = scmp.ne.s32.totalorder %s1382_s9, %s917_s26  ;;  %p923_p11 = scmp.lt.s32.totalorder %s1236_s18, %s917_s26 }
 0x126   : > { %p924_p13 = por %p923_p11, %p922_p12 }
 0x128   : > { %p925_p0 = pnand %p924_p13, %p918_p9 }
 0x12a   : > { %928 = shalt.err (!%p925_p0)  }
 0x12b   : > { %309 = dma.hbm_to_vmem [thread:$0]  %s297_s17, 16, %s1382_s9, [#allocation3] }
 0x12c   : > { %s1101_s7 = smov [#allocation2 + $0xc]   ;;  %s326_s3 = sadd.s32 13, %s1204_s11 }
 0x12d   : > { %s322_s0 = sshll.u32 %s1101_s7, 4  ;;  %s327_s1 = sld [smem:[#allocation5 + %s326_s3]]  ;;  %s323_s0 = int_to_ptr.vmem [resolvable:$true] %s322_s0 }
 0x12e   : > { %s342_s23 = sadd.s32 14, %s1204_s11  ;;  %s547_s10 = sshll.u32 %s311_s8, 4 }
 0x12f   : > { %s1102_s16 = smov [#allocation2 + $0xd]   ;;  %s313_s5 = scalar_lea.hbm %s1506_s2, %s547_s10 }
 0x130   : > { %s338_s30 = sshll.u32 %s1102_s16, 4  ;;  %s929_s13 = scalar_lea.hbm %s313_s5, 16  ;;  %s1413_s30 = int_to_ptr.vmem [resolvable:$true] %s338_s30 }
 0x131   : > { %p930_p1 = scmp.ne.s32.totalorder %s313_s5, %s929_s13  ;;  %p932_p2 = scmp.lt.s32.totalorder %s313_s5, %s1506_s2 }
 0x132   : > { %p933_p3 = scmp.lt.s32.totalorder %s1227_s14, %s929_s13 }
 0x134   : > { %p934_p4 = por %p933_p3, %p932_p2 }
 0x136   : > { %p935_p5 = pnand %p934_p4, %p930_p1 }
 0x138   : > { %938 = shalt.err (!%p935_p5)  }
 0x139   : > { %s939_s9 = scalar_lea.vmem %s323_s0, 16  ;;  %p944_p7 = scmp.lt.s32.totalorder %s323_s0, %s1212_s15 }
 0x13a   : > { %p940_p6 = scmp.ne.s32.totalorder %s323_s0, %s939_s9  ;;  %p945_p8 = scmp.lt.s32.totalorder %s1236_s18, %s939_s9 }
 0x13c   : > { %p946_p9 = por %p945_p8, %p944_p7 }
 0x13e   : > { %p947_p12 = pnand %p946_p9, %p940_p6 }
 0x140   : > { %950 = shalt.err (!%p947_p12)  }
 0x141   : > { %325 = dma.hbm_to_vmem [thread:$0]  %s313_s5, 16, %s323_s0, [#allocation3] }
 0x142   : > { %s343_s8 = sld [smem:[#allocation5 + %s342_s23]]  ;;  %s548_s17 = sshll.u32 %s327_s1, 4 }
 0x143   : > { %s329_s10 = scalar_lea.hbm %s1506_s2, %s548_s17  ;;  %s1103_s16 = smov [#allocation2 + $0xe]  }
 0x144   : > { %s354_s25 = sshll.u32 %s1103_s16, 4  ;;  %s951_s6 = scalar_lea.hbm %s329_s10, 16  ;;  %s355_s25 = int_to_ptr.vmem [resolvable:$true] %s354_s25 }
 0x145   : > { %p952_p11 = scmp.ne.s32.totalorder %s329_s10, %s951_s6  ;;  %p954_p13 = scmp.lt.s32.totalorder %s329_s10, %s1506_s2 }
 0x146   : > { %p955_p0 = scmp.lt.s32.totalorder %s1227_s14, %s951_s6 }
 0x148   : > { %p956_p1 = por %p955_p0, %p954_p13 }
 0x14a   : > { %p957_p2 = pnand %p956_p1, %p952_p11 }
 0x14c   : > { %960 = shalt.err (!%p957_p2)  }
 0x14d   : > { %s961_s0 = scalar_lea.vmem %s1413_s30, 16  ;;  %p966_p4 = scmp.lt.s32.totalorder %s1413_s30, %s1212_s15 }
 0x14e   : > { %p962_p3 = scmp.ne.s32.totalorder %s1413_s30, %s961_s0  ;;  %p967_p5 = scmp.lt.s32.totalorder %s1236_s18, %s961_s0 }
 0x150   : > { %p968_p6 = por %p967_p5, %p966_p4 }
 0x152   : > { %p969_p7 = pnand %p968_p6, %p962_p3 }
 0x154   : > { %972 = shalt.err (!%p969_p7)  }
 0x155   : > { %341 = dma.hbm_to_vmem [thread:$0]  %s329_s10, 16, %s1413_s30, [#allocation3] }
 0x156   : > { %s358_s1 = sadd.s32 15, %s1204_s11  ;;  %s549_s5 = sshll.u32 %s343_s8, 4 }
 0x157   : > { %s359_s23 = sld [smem:[#allocation5 + %s358_s1]]  ;;  %s345_s17 = scalar_lea.hbm %s1506_s2, %s549_s5 }
 0x158   : > { %s1104_s7 = smov [#allocation2 + $0xf]   ;;  %s973_s16 = scalar_lea.hbm %s345_s17, 16 }
 0x159   : > { %s370_s3 = sshll.u32 %s1104_s7, 4  ;;  %p974_p8 = scmp.ne.s32.totalorder %s345_s17, %s973_s16  ;;  %s371_s3 = int_to_ptr.vmem [resolvable:$true] %s370_s3 }
 0x15a   : > { %p976_p9 = scmp.lt.s32.totalorder %s345_s17, %s1506_s2  ;;  %p977_p12 = scmp.lt.s32.totalorder %s1227_s14, %s973_s16 }
 0x15c   : > { %p978_p11 = por %p977_p12, %p976_p9 }
 0x15e   : > { %p979_p13 = pnand %p978_p11, %p974_p8 }
 0x160   : > { %982 = shalt.err (!%p979_p13)  }
 0x161   : > { %s983_s11 = scalar_lea.vmem %s355_s25, 16  ;;  %p988_p1 = scmp.lt.s32.totalorder %s355_s25, %s1212_s15 }
 0x162   : > { %p984_p0 = scmp.ne.s32.totalorder %s355_s25, %s983_s11  ;;  %p989_p2 = scmp.lt.s32.totalorder %s1236_s18, %s983_s11 }
 0x164   : > { %p990_p3 = por %p989_p2, %p988_p1 }
 0x166   : > { %p991_p4 = pnand %p990_p3, %p984_p0 }
 0x168   : > { %994 = shalt.err (!%p991_p4)  }
 0x169   : > { %357 = dma.hbm_to_vmem [thread:$0]  %s345_s17, 16, %s355_s25, [#allocation3] }
 0x16a   : > { %s550_s30 = sshll.u32 %s359_s23, 4 }
 0x16b   : > { %s361_s27 = scalar_lea.hbm %s1506_s2, %s550_s30 }
 0x16c   : > { %s995_s0 = scalar_lea.hbm %s361_s27, 16  ;;  %p998_p6 = scmp.lt.s32.totalorder %s361_s27, %s1506_s2 }
 0x16d   : > { %p996_p5 = scmp.ne.s32.totalorder %s361_s27, %s995_s0  ;;  %p999_p7 = scmp.lt.s32.totalorder %s1227_s14, %s995_s0 }
 0x16f   : > { %p1000_p8 = por %p999_p7, %p998_p6 }
 0x171   : > { %p1001_p9 = pnand %p1000_p8, %p996_p5 }
 0x173   : > { %1004 = shalt.err (!%p1001_p9)  }
 0x174   : > { %s1005_s26 = scalar_lea.vmem %s371_s3, 16  ;;  %p1010_p11 = scmp.lt.s32.totalorder %s371_s3, %s1212_s15 }
 0x175   : > { %p1006_p12 = scmp.ne.s32.totalorder %s371_s3, %s1005_s26  ;;  %p1011_p13 = scmp.lt.s32.totalorder %s1236_s18, %s1005_s26 }
 0x177   : > { %p1012_p0 = por %p1011_p13, %p1010_p11 }
 0x179   : > { %p1013_p1 = pnand %p1012_p0, %p1006_p12 }
 0x17b   : > { %1016 = shalt.err (!%p1013_p1)  }
 0x17c   : > { %373 = dma.hbm_to_vmem [thread:$0]  %s361_s27, 16, %s371_s3, [#allocation3] }
 0x17d   : > { %s117_s25 = scalar_lea.vmem [#allocation10], %s1208_s12 }
 0x17e   : > { %1065 = dma.done.wait [#allocation3], 256 }
 0x17f   : > { %1066 = vsyncadd [#allocation3], 4294967040  ;;  %s557_s14 = sshll.u32 %s1157_s22, 8  ;;  %s428_s23 = sshll.u32 %s117_s25, 4  ;;  %v407_v0 = vld [vmem:[#allocation2] sm:$0xff]  ;;  %v409_v1 = vld [vmem:[#allocation7] sm:$0xff]  ;;  %s1460_s23 = int_to_ptr.vmem [resolvable:$true] %s428_s23 }
 0x180   : > { %v408_v2 = vld [vmem:[#allocation2 + $0x8] sm:$0xff]  ;;  %s1458_s15 = scalar_lea.hbm %s1508_s4, %s557_s14  ;;  %v410_v3 = vadd.f32 %v409_v1, %v407_v0  ;;  %s1518_s12 = sand.u32 1, %s1077_s20  }
 0x181   : > { %v411_v4 = vadd.f32 %v409_v1, %v408_v2  ;;  %s1464_s22 = scalar_lea.sflag [#allocation9], %s1518_s12  ;;  %s1017_s18 = scalar_lea.vmem %s1460_s23, 256 }
 0x182   : > { %412 = vst [vmem:[%s117_s25] sm:$0xff] %v410_v3  ;;  %p1018_p2 = scmp.ne.s32.totalorder %s1460_s23, %s1017_s18  ;;  %s1105_s7 = smov [#allocation10]  }
 0x183   : > { %413 = vst [vmem:[%s117_s25 + $0x8] sm:$0xff] %v411_v4  ;;  %s1021_s3 = sshll.u32 %s1105_s7, 4  ;;  %s1022_s3 = int_to_ptr.vmem [resolvable:$false] %s1021_s3 }
 0x184   : > { %p1019_p3 = pnand %p1018_p2, %p1174_p10  ;;  %s1023_s16 = scalar_lea.vmem %s1022_s3, 512 }
 0x185   : > { %p1024_p5 = scmp.lt.s32.totalorder %s1460_s23, %s1022_s3  ;;  %p1025_p6 = scmp.lt.s32.totalorder %s1023_s16, %s1017_s18 }
 0x186   : > { %p1020_p4 = pneg %p1019_p3 }
 0x187   : > { %p1026_p7 = por %p1025_p6, %p1024_p5 }
 0x189   : > { %p1027_p8 = pnand %p1026_p7, %p1020_p4 }
 0x18b   : > { %1030 = shalt.err (!%p1027_p8)
}
 0x18c   : > { %s1031_s6 = scalar_lea.hbm %s1458_s15, 256  ;;  %s1035_s30 = scalar_lea.hbm %s1508_s4, 512 }
 0x18d   : > { %p1032_p9 = scmp.ne.s32.totalorder %s1458_s15, %s1031_s6  ;;  %p1036_p13 = scmp.lt.s32.totalorder %s1458_s15, %s1508_s4 }
 0x18e   : > { %p1037_p0 = scmp.lt.s32.totalorder %s1035_s30, %s1031_s6 }
 0x18f   : > { %p1033_p12 = pnand %p1032_p9, %p1174_p10 }
 0x190   : > { %p1038_p1 = por %p1037_p0, %p1036_p13 }
 0x191   : > { %p1034_p11 = pneg %p1033_p12 }
 0x193   : > { %p1039_p2 = pnand %p1038_p1, %p1034_p11 }
 0x195   : > { %1042 = shalt.err (!%p1039_p2)
}
 0x196   : > { %s1106_s27 = smov 128   ;;  %s1107_s0 = smov 8  }
 0x197   : > { %562 = dma.vmem_to_hbm [thread:$0]  (%p1174_p10), %s1460_s23, 256, %s1458_s15, %s1464_s22, %s1106_s27, %s1106_s27, %s1107_s0  }
 0x198 PF: > { %p574_p3 = scmp.ge.s32.totalorder %s1085_s21, 2  ;;  %s443_s1 = sand.u32 1, %s1073_s19  }
 0x199   : > { %p1519_p4 = scmp.ne.s32.totalorder %s1515_s29, 0  ;;  %s444_s5 = scalar_lea.sflag [#allocation9], %s443_s1 }
 0x19b   : > { %p569_p5 = pnand %p574_p3, %p1519_p4 }
 0x19d   : > { %p570_p6 = pneg %p569_p5 }
 0x19f   : > { %1068 = dma.done.wait (%p570_p6), %s444_s5, 256  }
 0x1a0   : > { %1070 = vsyncadd (%p570_p6), %s444_s5, 4294967040  ;;  %s1520_s26 = sld [smem:[#allocation49_spill]]  ;;  %p22_p7 = scmp.ge.s32.totalorder %s1161_s24, 4  }
 0x1a1   : > { %s1521_s0 = sld [smem:[#allocation50_spill]]  ;;  %s1522_s19 = smov %s1077_s20 }
 0x1a2   : > { %s1524_s21 = smov %s1161_s24  ;;  %24 = sbr.rel (!%p22_p7) target bundleno = 19 (0x13), region = 156 }
 0x1a6   : > { %s1523_s20 = smov %s1520_s26 }
 0x1a7   :  { %449 = vsyncpa [#allocation8], 1 }
 0x1a8   :  { %451 = vsyncpa [#allocation8 + $0x1], 1 }
 0x1a9   :  { %452 = vsyncpa [#allocation9], 1 }
 0x1aa   :  { %454 = vsyncpa [#allocation9 + $0x1], 1 }
 0x1ab   :  { %455 = vsyncmov [#allocation3] }
 0x1ae   :  { %s456_s21 = vpop.sfrf %455 }
 0x1af   :  { %p556_p10 = scmp.ne.s32.totalorder %s456_s21, 0 }
 0x1b1   :  { %460 = shalt.err (%p556_p10)  }

</bundles_post_ra>
